<compile_context>
chip_gen: v7x
topology: tpu7x:2x2x1
jax: 0.10.0
libtpu: 0.0.40
codegen_flags: <defaults>
</compile_context>

<pallas_src>
import functools

import jax
import jax.numpy as jnp
from jax import lax
from jax.experimental import pallas as pl
from jax.experimental.pallas import tpu as pltpu


def fce_kernel(f_ref, g_ref, gt_ref, wxf_ref, wxr_ref, whh_ref, b_ref, out_ref):
    # Per-episode refs (leading batch dim squeezed away by the BlockSpecs):
    #   f_ref  : (N, D)     query features
    #   g_ref  : (K, D)     support set G
    #   gt_ref : (D, K)     G^T (pre-transposed in the wrapper)
    #   wxf_ref: (4, D, D)  per-gate weights acting on f   (rows :D of w_ih.T)
    #   wxr_ref: (4, D, D)  per-gate weights acting on r   (rows D: of w_ih.T)
    #   whh_ref: (4, D, D)  per-gate hidden weights        (w_hh.T)
    #   b_ref  : (4, 1, D)  per-gate bias (b_ih + b_hh)
    f = f_ref[...]
    G = g_ref[...]
    Gt = gt_ref[...]
    K = g_ref.shape[0]

    mm_dtype = gt_ref.dtype            # f32 by default; bf16 in bf16-matmul mode
    cd = lambda x: x.astype(mm_dtype)  # no-op when mm_dtype == f32

    # Loop-invariant: per-gate weights (loaded once) and the f-projection + bias.
    wxr = [wxr_ref[g] for g in range(4)]
    whh = [whh_ref[g] for g in range(4)]
    fx = [
        jnp.dot(cd(f), wxf_ref[g], preferred_element_type=jnp.float32) + b_ref[g]
        for g in range(4)
    ]

    def body(_, carry):
        h, c = carry
        # Attention logits over the support set: (N, K). Gt is loop-invariant.
        logits = jnp.dot(cd(h), Gt, preferred_element_type=jnp.float32)
        # Softmax over dim=1 (numerically stable); reciprocal on the EUP slot.
        m = jnp.max(logits, axis=1, keepdims=True)
        e = jnp.exp(logits - m)
        a = e * pl.reciprocal(jnp.sum(e, axis=1, keepdims=True), approx=True)
        # Readout r = a @ G : (N, D)
        r = jnp.dot(cd(a), G, preferred_element_type=jnp.float32)
        # LSTMCell gates, per-gate matmuls (output lands at lane offset 0);
        # the f-half (fx) + bias is hoisted out of the loop.
        rh = cd(r)
        hh = cd(h)
        gi = fx[0] + jnp.dot(rh, wxr[0], preferred_element_type=jnp.float32) \
                   + jnp.dot(hh, whh[0], preferred_element_type=jnp.float32)
        gf = fx[1] + jnp.dot(rh, wxr[1], preferred_element_type=jnp.float32) \
                   + jnp.dot(hh, whh[1], preferred_element_type=jnp.float32)
        gg = fx[2] + jnp.dot(rh, wxr[2], preferred_element_type=jnp.float32) \
                   + jnp.dot(hh, whh[2], preferred_element_type=jnp.float32)
        go = fx[3] + jnp.dot(rh, wxr[3], preferred_element_type=jnp.float32) \
                   + jnp.dot(hh, whh[3], preferred_element_type=jnp.float32)
        i_g = jax.nn.sigmoid(gi)
        f_g = jax.nn.sigmoid(gf)
        g_g = jnp.tanh(gg)
        o_g = jax.nn.sigmoid(go)
        c_new = f_g * c + i_g * g_g
        h_new = o_g * jnp.tanh(c_new) + f   # residual h = h + f
        return h_new, c_new

    h0 = f
    c0 = jnp.zeros_like(f)                  # c_0 = zeros(1, D) expanded to f
    # K is static -> fully unroll the recurrence for cross-iteration scheduling.
    h_final, _ = lax.fori_loop(0, K, body, (h0, c0), unroll=True)
    out_ref[...] = h_final.astype(out_ref.dtype)


def fully_contextual_embedding_batched(f, G, w_ih, w_hh, b_ih, b_hh,
                                        *, use_bf16_matmul=False):
    """Batched FCE forward.

    f: (B, N, D), G: (B, K, D); LSTMCell params in PyTorch layout:
    w_ih (4D, 2D), w_hh (4D, D), b_ih (4D,), b_hh (4D,).
    Returns (B, N, D) float32.
    """
    B, N, D = f.shape
    _, K, _ = G.shape

    # Split the LSTMCell weights per gate ([i|f|g|o]) and per input half (f vs r).
    wih_t = jnp.transpose(w_ih)   # (2D, 4D): rows 0:D act on f, rows D:2D on r
    whh_t = jnp.transpose(w_hh)   # (D, 4D)
    wxf = jnp.stack([wih_t[:D, g * D:(g + 1) * D] for g in range(4)])   # (4, D, D)
    wxr = jnp.stack([wih_t[D:, g * D:(g + 1) * D] for g in range(4)])   # (4, D, D)
    whh = jnp.stack([whh_t[:, g * D:(g + 1) * D] for g in range(4)])    # (4, D, D)
    b = (b_ih + b_hh).reshape(4, 1, D).astype(jnp.float32)              # (4, 1, D)
    Gt = jnp.transpose(G, (0, 2, 1))                                    # (B, D, K)

    if use_bf16_matmul:
        # Production lever for v6e/v7x (large D): bf16 MXU operands, f32 accum.
        G, Gt = G.astype(jnp.bfloat16), Gt.astype(jnp.bfloat16)
        wxf, wxr, whh = (w.astype(jnp.bfloat16) for w in (wxf, wxr, whh))

    def ep_spec(shape):
        # One episode per grid step; leading batch dim squeezed out of the ref.
        return pl.BlockSpec((None,) + shape, lambda b: (b, 0, 0))

    def full_spec(arr):
        # Grid-invariant (shared weights): same full block every step.
        return pl.BlockSpec(arr.shape, lambda b: (0,) * arr.ndim)

    return pl.pallas_call(
        fce_kernel,
        out_shape=jax.ShapeDtypeStruct((B, N, D), jnp.float32),
        grid=(B,),
        in_specs=[
            ep_spec((N, D)),          # f
            ep_spec((K, D)),          # G
            ep_spec((D, K)),          # G^T
            full_spec(wxf),
            full_spec(wxr),
            full_spec(whh),
            full_spec(b),
        ],
        out_specs=ep_spec((N, D)),
        compiler_params=pltpu.CompilerParams(
            dimension_semantics=("parallel",)),   # shards episodes across TCs (v7x)
    )(f, G, Gt, wxf, wxr, whh, b)


def fully_contextual_embedding(f, G, w_ih, w_hh, b_ih, b_hh, **kw):
    """Unbatched convenience wrapper: f (N, D), G (K, D) -> (N, D)."""
    out = fully_contextual_embedding_batched(f[None], G[None],
                                             w_ih, w_hh, b_ih, b_hh, **kw)
    return out[0]


def _reference(f, G, w_ih, w_hh, b_ih, b_hh):
    # Pure-JAX reference mirroring the PyTorch forward exactly (f32 throughout).
    D = f.shape[1]
    h = f
    c = jnp.zeros_like(f)
    K = G.shape[0]
    for _ in range(K):
        logits = h @ G.T
        a = jax.nn.softmax(logits, axis=1)
        r = a @ G
        x = jnp.concatenate([f, r], axis=1)
        gates = x @ w_ih.T + b_ih + h @ w_hh.T + b_hh
        i_g = jax.nn.sigmoid(gates[:, 0 * D:1 * D])
        f_g = jax.nn.sigmoid(gates[:, 1 * D:2 * D])
        g_g = jnp.tanh(gates[:, 2 * D:3 * D])
        o_g = jax.nn.sigmoid(gates[:, 3 * D:4 * D])
        c = f_g * c + i_g * g_g
        h = o_g * jnp.tanh(c)
        h = h + f
    return h


if __name__ == "__main__":
    out_dim = 32     # D
    N = 8            # queries per episode
    K = 8            # support-set size
    B = 2            # episodes batched through the grid

    key = jax.random.PRNGKey(0)
    kf, kg, k1, k2, k3, k4 = jax.random.split(key, 6)

    f = jax.random.normal(kf, (B, N, out_dim), dtype=jnp.float32)
    G = jax.random.normal(kg, (B, K, out_dim), dtype=jnp.float32)

    # Deterministic LSTMCell parameters (PyTorch shapes), shared across episodes.
    bound = 1.0 / jnp.sqrt(out_dim)
    w_ih = jax.random.uniform(k1, (4 * out_dim, 2 * out_dim),
                              minval=-bound, maxval=bound, dtype=jnp.float32)
    w_hh = jax.random.uniform(k2, (4 * out_dim, out_dim),
                              minval=-bound, maxval=bound, dtype=jnp.float32)
    b_ih = jax.random.uniform(k3, (4 * out_dim,),
                              minval=-bound, maxval=bound, dtype=jnp.float32)
    b_hh = jax.random.uniform(k4, (4 * out_dim,),
                              minval=-bound, maxval=bound, dtype=jnp.float32)

    run = jax.jit(functools.partial(fully_contextual_embedding_batched,
                                    use_bf16_matmul=False))
    out = jax.block_until_ready(run(f, G, w_ih, w_hh, b_ih, b_hh))
    assert out.shape == (B, N, out_dim)

    # Per-episode reference (matches the PyTorch module semantics).
    ref = jnp.stack([_reference(f[i], G[i], w_ih, w_hh, b_ih, b_hh)
                     for i in range(B)])
    # Tolerance loosened slightly vs 1e-4: approx EUP reciprocal in the softmax.
    assert jnp.allclose(out, ref, atol=5e-3, rtol=5e-3), "mismatch vs JAX reference"

    print("KERNEL_OK")
</pallas_src>

<mosaic_0001>
module attributes {stable_mosaic.version = 11 : i64} {
  func.func @fce_kernel(%arg0: i32, %arg1: memref<1x8x32xf32, #tpu.memory_space<vmem>>, %arg2: memref<1x8x32xf32, #tpu.memory_space<vmem>>, %arg3: memref<1x32x8xf32, #tpu.memory_space<vmem>>, %arg4: memref<4x32x32xf32, #tpu.memory_space<vmem>>, %arg5: memref<4x32x32xf32, #tpu.memory_space<vmem>>, %arg6: memref<4x32x32xf32, #tpu.memory_space<vmem>>, %arg7: memref<4x1x32xf32, #tpu.memory_space<vmem>>, %arg8: memref<1x8x32xf32, #tpu.memory_space<vmem>>) attributes {dimension_semantics = [#tpu.dimension_semantics<parallel>], iteration_bounds = array<i64: 2>, scalar_prefetch = 0 : i64, scratch_operands = 0 : i64, tpu.core_type = #tpu.core_type<tc>, window_params = [{transform_indices = @transform_0, window_bounds = array<i64: 1, 8, 32>}, {transform_indices = @transform_1, window_bounds = array<i64: 1, 8, 32>}, {transform_indices = @transform_2, window_bounds = array<i64: 1, 32, 8>}, {pipeline_mode = #tpu.pipeline_mode<synchronous>, transform_indices = @transform_3, window_bounds = array<i64: 4, 32, 32>}, {pipeline_mode = #tpu.pipeline_mode<synchronous>, transform_indices = @transform_4, window_bounds = array<i64: 4, 32, 32>}, {pipeline_mode = #tpu.pipeline_mode<synchronous>, transform_indices = @transform_5, window_bounds = array<i64: 4, 32, 32>}, {pipeline_mode = #tpu.pipeline_mode<synchronous>, transform_indices = @transform_6, window_bounds = array<i64: 4, 1, 32>}, {transform_indices = @transform_7, window_bounds = array<i64: 1, 8, 32>}]} {
    %c0 = arith.constant 0 : index
    %c0_0 = arith.constant 0 : index
    %c0_1 = arith.constant 0 : index
    %0 = vector.load %arg1[%c0, %c0_0, %c0_1] : memref<1x8x32xf32, #tpu.memory_space<vmem>>, vector<1x8x32xf32>
    %1 = vector.shape_cast %0 : vector<1x8x32xf32> to vector<8x32xf32>
    %c0_2 = arith.constant 0 : index
    %c0_3 = arith.constant 0 : index
    %c0_4 = arith.constant 0 : index
    %2 = vector.load %arg2[%c0_2, %c0_3, %c0_4] : memref<1x8x32xf32, #tpu.memory_space<vmem>>, vector<1x8x32xf32>
    %3 = vector.shape_cast %2 : vector<1x8x32xf32> to vector<8x32xf32>
    %c0_5 = arith.constant 0 : index
    %c0_6 = arith.constant 0 : index
    %c0_7 = arith.constant 0 : index
    %4 = vector.load %arg3[%c0_5, %c0_6, %c0_7] : memref<1x32x8xf32, #tpu.memory_space<vmem>>, vector<1x32x8xf32>
    %5 = vector.shape_cast %4 : vector<1x32x8xf32> to vector<32x8xf32>
    %c0_8 = arith.constant 0 : index
    %c0_9 = arith.constant 0 : index
    %c0_10 = arith.constant 0 : index
    %6 = vector.load %arg5[%c0_8, %c0_9, %c0_10] : memref<4x32x32xf32, #tpu.memory_space<vmem>>, vector<1x32x32xf32>
    %7 = vector.shape_cast %6 : vector<1x32x32xf32> to vector<32x32xf32>
    %c1 = arith.constant 1 : index
    %c0_11 = arith.constant 0 : index
    %c0_12 = arith.constant 0 : index
    %8 = vector.load %arg5[%c1, %c0_11, %c0_12] : memref<4x32x32xf32, #tpu.memory_space<vmem>>, vector<1x32x32xf32>
    %9 = vector.shape_cast %8 : vector<1x32x32xf32> to vector<32x32xf32>
    %c2 = arith.constant 2 : index
    %c0_13 = arith.constant 0 : index
    %c0_14 = arith.constant 0 : index
    %10 = vector.load %arg5[%c2, %c0_13, %c0_14] : memref<4x32x32xf32, #tpu.memory_space<vmem>>, vector<1x32x32xf32>
    %11 = vector.shape_cast %10 : vector<1x32x32xf32> to vector<32x32xf32>
    %c3 = arith.constant 3 : index
    %c0_15 = arith.constant 0 : index
    %c0_16 = arith.constant 0 : index
    %12 = vector.load %arg5[%c3, %c0_15, %c0_16] : memref<4x32x32xf32, #tpu.memory_space<vmem>>, vector<1x32x32xf32>
    %13 = vector.shape_cast %12 : vector<1x32x32xf32> to vector<32x32xf32>
    %c0_17 = arith.constant 0 : index
    %c0_18 = arith.constant 0 : index
    %c0_19 = arith.constant 0 : index
    %14 = vector.load %arg6[%c0_17, %c0_18, %c0_19] : memref<4x32x32xf32, #tpu.memory_space<vmem>>, vector<1x32x32xf32>
    %15 = vector.shape_cast %14 : vector<1x32x32xf32> to vector<32x32xf32>
    %c1_20 = arith.constant 1 : index
    %c0_21 = arith.constant 0 : index
    %c0_22 = arith.constant 0 : index
    %16 = vector.load %arg6[%c1_20, %c0_21, %c0_22] : memref<4x32x32xf32, #tpu.memory_space<vmem>>, vector<1x32x32xf32>
    %17 = vector.shape_cast %16 : vector<1x32x32xf32> to vector<32x32xf32>
    %c2_23 = arith.constant 2 : index
    %c0_24 = arith.constant 0 : index
    %c0_25 = arith.constant 0 : index
    %18 = vector.load %arg6[%c2_23, %c0_24, %c0_25] : memref<4x32x32xf32, #tpu.memory_space<vmem>>, vector<1x32x32xf32>
    %19 = vector.shape_cast %18 : vector<1x32x32xf32> to vector<32x32xf32>
    %c3_26 = arith.constant 3 : index
    %c0_27 = arith.constant 0 : index
    %c0_28 = arith.constant 0 : index
    %20 = vector.load %arg6[%c3_26, %c0_27, %c0_28] : memref<4x32x32xf32, #tpu.memory_space<vmem>>, vector<1x32x32xf32>
    %21 = vector.shape_cast %20 : vector<1x32x32xf32> to vector<32x32xf32>
    %c0_29 = arith.constant 0 : index
    %c0_30 = arith.constant 0 : index
    %c0_31 = arith.constant 0 : index
    %22 = vector.load %arg4[%c0_29, %c0_30, %c0_31] : memref<4x32x32xf32, #tpu.memory_space<vmem>>, vector<1x32x32xf32>
    %23 = vector.shape_cast %22 : vector<1x32x32xf32> to vector<32x32xf32>
    %cst = arith.constant dense<0.000000e+00> : vector<8x32xf32>
    %24 = tpu.matmul %1, %23, %cst {dimension_numbers = #tpu.dot_dimension_numbers<[1], [0], [0], [1], [0, 0, 1, 1], [], []>} : vector<8x32xf32>, vector<32x32xf32>, vector<8x32xf32> -> vector<8x32xf32>
    %c0_32 = arith.constant 0 : index
    %c0_33 = arith.constant 0 : index
    %c0_34 = arith.constant 0 : index
    %25 = vector.load %arg7[%c0_32, %c0_33, %c0_34] : memref<4x1x32xf32, #tpu.memory_space<vmem>>, vector<1x1x32xf32>
    %26 = vector.shape_cast %25 : vector<1x1x32xf32> to vector<1x32xf32>
    %27 = vector.broadcast %26 : vector<1x32xf32> to vector<8x32xf32>
    %28 = arith.addf %24, %27 : vector<8x32xf32>
    %c1_35 = arith.constant 1 : index
    %c0_36 = arith.constant 0 : index
    %c0_37 = arith.constant 0 : index
    %29 = vector.load %arg4[%c1_35, %c0_36, %c0_37] : memref<4x32x32xf32, #tpu.memory_space<vmem>>, vector<1x32x32xf32>
    %30 = vector.shape_cast %29 : vector<1x32x32xf32> to vector<32x32xf32>
    %cst_38 = arith.constant dense<0.000000e+00> : vector<8x32xf32>
    %31 = tpu.matmul %1, %30, %cst_38 {dimension_numbers = #tpu.dot_dimension_numbers<[1], [0], [0], [1], [0, 0, 1, 1], [], []>} : vector<8x32xf32>, vector<32x32xf32>, vector<8x32xf32> -> vector<8x32xf32>
    %c1_39 = arith.constant 1 : index
    %c0_40 = arith.constant 0 : index
    %c0_41 = arith.constant 0 : index
    %32 = vector.load %arg7[%c1_39, %c0_40, %c0_41] : memref<4x1x32xf32, #tpu.memory_space<vmem>>, vector<1x1x32xf32>
    %33 = vector.shape_cast %32 : vector<1x1x32xf32> to vector<1x32xf32>
    %34 = vector.broadcast %33 : vector<1x32xf32> to vector<8x32xf32>
    %35 = arith.addf %31, %34 : vector<8x32xf32>
    %c2_42 = arith.constant 2 : index
    %c0_43 = arith.constant 0 : index
    %c0_44 = arith.constant 0 : index
    %36 = vector.load %arg4[%c2_42, %c0_43, %c0_44] : memref<4x32x32xf32, #tpu.memory_space<vmem>>, vector<1x32x32xf32>
    %37 = vector.shape_cast %36 : vector<1x32x32xf32> to vector<32x32xf32>
    %cst_45 = arith.constant dense<0.000000e+00> : vector<8x32xf32>
    %38 = tpu.matmul %1, %37, %cst_45 {dimension_numbers = #tpu.dot_dimension_numbers<[1], [0], [0], [1], [0, 0, 1, 1], [], []>} : vector<8x32xf32>, vector<32x32xf32>, vector<8x32xf32> -> vector<8x32xf32>
    %c2_46 = arith.constant 2 : index
    %c0_47 = arith.constant 0 : index
    %c0_48 = arith.constant 0 : index
    %39 = vector.load %arg7[%c2_46, %c0_47, %c0_48] : memref<4x1x32xf32, #tpu.memory_space<vmem>>, vector<1x1x32xf32>
    %40 = vector.shape_cast %39 : vector<1x1x32xf32> to vector<1x32xf32>
    %41 = vector.broadcast %40 : vector<1x32xf32> to vector<8x32xf32>
    %42 = arith.addf %38, %41 : vector<8x32xf32>
    %c3_49 = arith.constant 3 : index
    %c0_50 = arith.constant 0 : index
    %c0_51 = arith.constant 0 : index
    %43 = vector.load %arg4[%c3_49, %c0_50, %c0_51] : memref<4x32x32xf32, #tpu.memory_space<vmem>>, vector<1x32x32xf32>
    %44 = vector.shape_cast %43 : vector<1x32x32xf32> to vector<32x32xf32>
    %cst_52 = arith.constant dense<0.000000e+00> : vector<8x32xf32>
    %45 = tpu.matmul %1, %44, %cst_52 {dimension_numbers = #tpu.dot_dimension_numbers<[1], [0], [0], [1], [0, 0, 1, 1], [], []>} : vector<8x32xf32>, vector<32x32xf32>, vector<8x32xf32> -> vector<8x32xf32>
    %c3_53 = arith.constant 3 : index
    %c0_54 = arith.constant 0 : index
    %c0_55 = arith.constant 0 : index
    %46 = vector.load %arg7[%c3_53, %c0_54, %c0_55] : memref<4x1x32xf32, #tpu.memory_space<vmem>>, vector<1x1x32xf32>
    %47 = vector.shape_cast %46 : vector<1x1x32xf32> to vector<1x32xf32>
    %48 = vector.broadcast %47 : vector<1x32xf32> to vector<8x32xf32>
    %49 = arith.addf %45, %48 : vector<8x32xf32>
    %cst_56 = arith.constant 0.000000e+00 : f32
    %50 = vector.broadcast %cst_56 : f32 to vector<8x32xf32>
    %c0_i32 = arith.constant 0 : i32
    %cst_57 = arith.constant dense<0.000000e+00> : vector<8x8xf32>
    %51 = tpu.matmul %1, %5, %cst_57 {dimension_numbers = #tpu.dot_dimension_numbers<[1], [0], [0], [1], [0, 0, 1, 1], [], []>} : vector<8x32xf32>, vector<32x8xf32>, vector<8x8xf32> -> vector<8x8xf32>
    %cst_58 = arith.constant dense<0xFF800000> : vector<8xf32>
    %52 = vector.multi_reduction <maximumf>, %51, %cst_58 [1] : vector<8x8xf32> to vector<8xf32>
    %53 = vector.shape_cast %52 : vector<8xf32> to vector<8x1xf32>
    %54 = vector.broadcast %53 : vector<8x1xf32> to vector<8x8xf32>
    %55 = arith.subf %51, %54 : vector<8x8xf32>
    %56 = math.exp %55 : vector<8x8xf32>
    %cst_59 = arith.constant dense<0.000000e+00> : vector<8xf32>
    %57 = vector.multi_reduction <add>, %56, %cst_59 [1] : vector<8x8xf32> to vector<8xf32>
    %58 = vector.shape_cast %57 : vector<8xf32> to vector<8x1xf32>
    %59 = tpu.reciprocal %58 {approx = true} : vector<8x1xf32> -> vector<8x1xf32>
    %60 = vector.broadcast %59 : vector<8x1xf32> to vector<8x8xf32>
    %61 = arith.mulf %56, %60 : vector<8x8xf32>
    %cst_60 = arith.constant dense<0.000000e+00> : vector<8x32xf32>
    %62 = tpu.matmul %61, %3, %cst_60 {dimension_numbers = #tpu.dot_dimension_numbers<[1], [0], [0], [1], [0, 0, 1, 1], [], []>} : vector<8x8xf32>, vector<8x32xf32>, vector<8x32xf32> -> vector<8x32xf32>
    %cst_61 = arith.constant dense<0.000000e+00> : vector<8x32xf32>
    %63 = tpu.matmul %62, %7, %cst_61 {dimension_numbers = #tpu.dot_dimension_numbers<[1], [0], [0], [1], [0, 0, 1, 1], [], []>} : vector<8x32xf32>, vector<32x32xf32>, vector<8x32xf32> -> vector<8x32xf32>
    %64 = arith.addf %28, %63 : vector<8x32xf32>
    %cst_62 = arith.constant dense<0.000000e+00> : vector<8x32xf32>
    %65 = tpu.matmul %1, %15, %cst_62 {dimension_numbers = #tpu.dot_dimension_numbers<[1], [0], [0], [1], [0, 0, 1, 1], [], []>} : vector<8x32xf32>, vector<32x32xf32>, vector<8x32xf32> -> vector<8x32xf32>
    %66 = arith.addf %64, %65 : vector<8x32xf32>
    %cst_63 = arith.constant dense<0.000000e+00> : vector<8x32xf32>
    %67 = tpu.matmul %62, %9, %cst_63 {dimension_numbers = #tpu.dot_dimension_numbers<[1], [0], [0], [1], [0, 0, 1, 1], [], []>} : vector<8x32xf32>, vector<32x32xf32>, vector<8x32xf32> -> vector<8x32xf32>
    %68 = arith.addf %35, %67 : vector<8x32xf32>
    %cst_64 = arith.constant dense<0.000000e+00> : vector<8x32xf32>
    %69 = tpu.matmul %1, %17, %cst_64 {dimension_numbers = #tpu.dot_dimension_numbers<[1], [0], [0], [1], [0, 0, 1, 1], [], []>} : vector<8x32xf32>, vector<32x32xf32>, vector<8x32xf32> -> vector<8x32xf32>
    %70 = arith.addf %68, %69 : vector<8x32xf32>
    %cst_65 = arith.constant dense<0.000000e+00> : vector<8x32xf32>
    %71 = tpu.matmul %62, %11, %cst_65 {dimension_numbers = #tpu.dot_dimension_numbers<[1], [0], [0], [1], [0, 0, 1, 1], [], []>} : vector<8x32xf32>, vector<32x32xf32>, vector<8x32xf32> -> vector<8x32xf32>
    %72 = arith.addf %42, %71 : vector<8x32xf32>
    %cst_66 = arith.constant dense<0.000000e+00> : vector<8x32xf32>
    %73 = tpu.matmul %1, %19, %cst_66 {dimension_numbers = #tpu.dot_dimension_numbers<[1], [0], [0], [1], [0, 0, 1, 1], [], []>} : vector<8x32xf32>, vector<32x32xf32>, vector<8x32xf32> -> vector<8x32xf32>
    %74 = arith.addf %72, %73 : vector<8x32xf32>
    %cst_67 = arith.constant dense<0.000000e+00> : vector<8x32xf32>
    %75 = tpu.matmul %62, %13, %cst_67 {dimension_numbers = #tpu.dot_dimension_numbers<[1], [0], [0], [1], [0, 0, 1, 1], [], []>} : vector<8x32xf32>, vector<32x32xf32>, vector<8x32xf32> -> vector<8x32xf32>
    %76 = arith.addf %49, %75 : vector<8x32xf32>
    %cst_68 = arith.constant dense<0.000000e+00> : vector<8x32xf32>
    %77 = tpu.matmul %1, %21, %cst_68 {dimension_numbers = #tpu.dot_dimension_numbers<[1], [0], [0], [1], [0, 0, 1, 1], [], []>} : vector<8x32xf32>, vector<32x32xf32>, vector<8x32xf32> -> vector<8x32xf32>
    %78 = arith.addf %76, %77 : vector<8x32xf32>
    %79 = arith.negf %66 : vector<8x32xf32>
    %80 = math.exp %79 : vector<8x32xf32>
    %cst_69 = arith.constant 1.000000e+00 : f32
    %81 = vector.broadcast %cst_69 : f32 to vector<8x32xf32>
    %82 = arith.addf %81, %80 : vector<8x32xf32>
    %83 = arith.divf %81, %82 : vector<8x32xf32>
    %84 = arith.negf %70 : vector<8x32xf32>
    %85 = math.exp %84 : vector<8x32xf32>
    %cst_70 = arith.constant 1.000000e+00 : f32
    %86 = vector.broadcast %cst_70 : f32 to vector<8x32xf32>
    %87 = arith.addf %86, %85 : vector<8x32xf32>
    %88 = arith.divf %86, %87 : vector<8x32xf32>
    %89 = math.tanh %74 : vector<8x32xf32>
    %90 = arith.negf %78 : vector<8x32xf32>
    %91 = math.exp %90 : vector<8x32xf32>
    %cst_71 = arith.constant 1.000000e+00 : f32
    %92 = vector.broadcast %cst_71 : f32 to vector<8x32xf32>
    %93 = arith.addf %92, %91 : vector<8x32xf32>
    %94 = arith.divf %92, %93 : vector<8x32xf32>
    %95 = arith.mulf %88, %50 : vector<8x32xf32>
    %96 = arith.mulf %83, %89 : vector<8x32xf32>
    %97 = arith.addf %95, %96 : vector<8x32xf32>
    %98 = math.tanh %97 : vector<8x32xf32>
    %99 = arith.mulf %94, %98 : vector<8x32xf32>
    %100 = arith.addf %99, %1 : vector<8x32xf32>
    %c1_i32 = arith.constant 1 : i32
    %cst_72 = arith.constant dense<0.000000e+00> : vector<8x8xf32>
    %101 = tpu.matmul %100, %5, %cst_72 {dimension_numbers = #tpu.dot_dimension_numbers<[1], [0], [0], [1], [0, 0, 1, 1], [], []>} : vector<8x32xf32>, vector<32x8xf32>, vector<8x8xf32> -> vector<8x8xf32>
    %cst_73 = arith.constant dense<0xFF800000> : vector<8xf32>
    %102 = vector.multi_reduction <maximumf>, %101, %cst_73 [1] : vector<8x8xf32> to vector<8xf32>
    %103 = vector.shape_cast %102 : vector<8xf32> to vector<8x1xf32>
    %104 = vector.broadcast %103 : vector<8x1xf32> to vector<8x8xf32>
    %105 = arith.subf %101, %104 : vector<8x8xf32>
    %106 = math.exp %105 : vector<8x8xf32>
    %cst_74 = arith.constant dense<0.000000e+00> : vector<8xf32>
    %107 = vector.multi_reduction <add>, %106, %cst_74 [1] : vector<8x8xf32> to vector<8xf32>
    %108 = vector.shape_cast %107 : vector<8xf32> to vector<8x1xf32>
    %109 = tpu.reciprocal %108 {approx = true} : vector<8x1xf32> -> vector<8x1xf32>
    %110 = vector.broadcast %109 : vector<8x1xf32> to vector<8x8xf32>
    %111 = arith.mulf %106, %110 : vector<8x8xf32>
    %cst_75 = arith.constant dense<0.000000e+00> : vector<8x32xf32>
    %112 = tpu.matmul %111, %3, %cst_75 {dimension_numbers = #tpu.dot_dimension_numbers<[1], [0], [0], [1], [0, 0, 1, 1], [], []>} : vector<8x8xf32>, vector<8x32xf32>, vector<8x32xf32> -> vector<8x32xf32>
    %cst_76 = arith.constant dense<0.000000e+00> : vector<8x32xf32>
    %113 = tpu.matmul %112, %7, %cst_76 {dimension_numbers = #tpu.dot_dimension_numbers<[1], [0], [0], [1], [0, 0, 1, 1], [], []>} : vector<8x32xf32>, vector<32x32xf32>, vector<8x32xf32> -> vector<8x32xf32>
    %114 = arith.addf %28, %113 : vector<8x32xf32>
    %cst_77 = arith.constant dense<0.000000e+00> : vector<8x32xf32>
    %115 = tpu.matmul %100, %15, %cst_77 {dimension_numbers = #tpu.dot_dimension_numbers<[1], [0], [0], [1], [0, 0, 1, 1], [], []>} : vector<8x32xf32>, vector<32x32xf32>, vector<8x32xf32> -> vector<8x32xf32>
    %116 = arith.addf %114, %115 : vector<8x32xf32>
    %cst_78 = arith.constant dense<0.000000e+00> : vector<8x32xf32>
    %117 = tpu.matmul %112, %9, %cst_78 {dimension_numbers = #tpu.dot_dimension_numbers<[1], [0], [0], [1], [0, 0, 1, 1], [], []>} : vector<8x32xf32>, vector<32x32xf32>, vector<8x32xf32> -> vector<8x32xf32>
    %118 = arith.addf %35, %117 : vector<8x32xf32>
    %cst_79 = arith.constant dense<0.000000e+00> : vector<8x32xf32>
    %119 = tpu.matmul %100, %17, %cst_79 {dimension_numbers = #tpu.dot_dimension_numbers<[1], [0], [0], [1], [0, 0, 1, 1], [], []>} : vector<8x32xf32>, vector<32x32xf32>, vector<8x32xf32> -> vector<8x32xf32>
    %120 = arith.addf %118, %119 : vector<8x32xf32>
    %cst_80 = arith.constant dense<0.000000e+00> : vector<8x32xf32>
    %121 = tpu.matmul %112, %11, %cst_80 {dimension_numbers = #tpu.dot_dimension_numbers<[1], [0], [0], [1], [0, 0, 1, 1], [], []>} : vector<8x32xf32>, vector<32x32xf32>, vector<8x32xf32> -> vector<8x32xf32>
    %122 = arith.addf %42, %121 : vector<8x32xf32>
    %cst_81 = arith.constant dense<0.000000e+00> : vector<8x32xf32>
    %123 = tpu.matmul %100, %19, %cst_81 {dimension_numbers = #tpu.dot_dimension_numbers<[1], [0], [0], [1], [0, 0, 1, 1], [], []>} : vector<8x32xf32>, vector<32x32xf32>, vector<8x32xf32> -> vector<8x32xf32>
    %124 = arith.addf %122, %123 : vector<8x32xf32>
    %cst_82 = arith.constant dense<0.000000e+00> : vector<8x32xf32>
    %125 = tpu.matmul %112, %13, %cst_82 {dimension_numbers = #tpu.dot_dimension_numbers<[1], [0], [0], [1], [0, 0, 1, 1], [], []>} : vector<8x32xf32>, vector<32x32xf32>, vector<8x32xf32> -> vector<8x32xf32>
    %126 = arith.addf %49, %125 : vector<8x32xf32>
    %cst_83 = arith.constant dense<0.000000e+00> : vector<8x32xf32>
    %127 = tpu.matmul %100, %21, %cst_83 {dimension_numbers = #tpu.dot_dimension_numbers<[1], [0], [0], [1], [0, 0, 1, 1], [], []>} : vector<8x32xf32>, vector<32x32xf32>, vector<8x32xf32> -> vector<8x32xf32>
    %128 = arith.addf %126, %127 : vector<8x32xf32>
    %129 = arith.negf %116 : vector<8x32xf32>
    %130 = math.exp %129 : vector<8x32xf32>
    %cst_84 = arith.constant 1.000000e+00 : f32
    %131 = vector.broadcast %cst_84 : f32 to vector<8x32xf32>
    %132 = arith.addf %131, %130 : vector<8x32xf32>
    %133 = arith.divf %131, %132 : vector<8x32xf32>
    %134 = arith.negf %120 : vector<8x32xf32>
    %135 = math.exp %134 : vector<8x32xf32>
    %cst_85 = arith.constant 1.000000e+00 : f32
    %136 = vector.broadcast %cst_85 : f32 to vector<8x32xf32>
    %137 = arith.addf %136, %135 : vector<8x32xf32>
    %138 = arith.divf %136, %137 : vector<8x32xf32>
    %139 = math.tanh %124 : vector<8x32xf32>
    %140 = arith.negf %128 : vector<8x32xf32>
    %141 = math.exp %140 : vector<8x32xf32>
    %cst_86 = arith.constant 1.000000e+00 : f32
    %142 = vector.broadcast %cst_86 : f32 to vector<8x32xf32>
    %143 = arith.addf %142, %141 : vector<8x32xf32>
    %144 = arith.divf %142, %143 : vector<8x32xf32>
    %145 = arith.mulf %138, %97 : vector<8x32xf32>
    %146 = arith.mulf %133, %139 : vector<8x32xf32>
    %147 = arith.addf %145, %146 : vector<8x32xf32>
    %148 = math.tanh %147 : vector<8x32xf32>
    %149 = arith.mulf %144, %148 : vector<8x32xf32>
    %150 = arith.addf %149, %1 : vector<8x32xf32>
    %c2_i32 = arith.constant 2 : i32
    %cst_87 = arith.constant dense<0.000000e+00> : vector<8x8xf32>
    %151 = tpu.matmul %150, %5, %cst_87 {dimension_numbers = #tpu.dot_dimension_numbers<[1], [0], [0], [1], [0, 0, 1, 1], [], []>} : vector<8x32xf32>, vector<32x8xf32>, vector<8x8xf32> -> vector<8x8xf32>
    %cst_88 = arith.constant dense<0xFF800000> : vector<8xf32>
    %152 = vector.multi_reduction <maximumf>, %151, %cst_88 [1] : vector<8x8xf32> to vector<8xf32>
    %153 = vector.shape_cast %152 : vector<8xf32> to vector<8x1xf32>
    %154 = vector.broadcast %153 : vector<8x1xf32> to vector<8x8xf32>
    %155 = arith.subf %151, %154 : vector<8x8xf32>
    %156 = math.exp %155 : vector<8x8xf32>
    %cst_89 = arith.constant dense<0.000000e+00> : vector<8xf32>
    %157 = vector.multi_reduction <add>, %156, %cst_89 [1] : vector<8x8xf32> to vector<8xf32>
    %158 = vector.shape_cast %157 : vector<8xf32> to vector<8x1xf32>
    %159 = tpu.reciprocal %158 {approx = true} : vector<8x1xf32> -> vector<8x1xf32>
    %160 = vector.broadcast %159 : vector<8x1xf32> to vector<8x8xf32>
    %161 = arith.mulf %156, %160 : vector<8x8xf32>
    %cst_90 = arith.constant dense<0.000000e+00> : vector<8x32xf32>
    %162 = tpu.matmul %161, %3, %cst_90 {dimension_numbers = #tpu.dot_dimension_numbers<[1], [0], [0], [1], [0, 0, 1, 1], [], []>} : vector<8x8xf32>, vector<8x32xf32>, vector<8x32xf32> -> vector<8x32xf32>
    %cst_91 = arith.constant dense<0.000000e+00> : vector<8x32xf32>
    %163 = tpu.matmul %162, %7, %cst_91 {dimension_numbers = #tpu.dot_dimension_numbers<[1], [0], [0], [1], [0, 0, 1, 1], [], []>} : vector<8x32xf32>, vector<32x32xf32>, vector<8x32xf32> -> vector<8x32xf32>
    %164 = arith.addf %28, %163 : vector<8x32xf32>
    %cst_92 = arith.constant dense<0.000000e+00> : vector<8x32xf32>
    %165 = tpu.matmul %150, %15, %cst_92 {dimension_numbers = #tpu.dot_dimension_numbers<[1], [0], [0], [1], [0, 0, 1, 1], [], []>} : vector<8x32xf32>, vector<32x32xf32>, vector<8x32xf32> -> vector<8x32xf32>
    %166 = arith.addf %164, %165 : vector<8x32xf32>
    %cst_93 = arith.constant dense<0.000000e+00> : vector<8x32xf32>
    %167 = tpu.matmul %162, %9, %cst_93 {dimension_numbers = #tpu.dot_dimension_numbers<[1], [0], [0], [1], [0, 0, 1, 1], [], []>} : vector<8x32xf32>, vector<32x32xf32>, vector<8x32xf32> -> vector<8x32xf32>
    %168 = arith.addf %35, %167 : vector<8x32xf32>
    %cst_94 = arith.constant dense<0.000000e+00> : vector<8x32xf32>
    %169 = tpu.matmul %150, %17, %cst_94 {dimension_numbers = #tpu.dot_dimension_numbers<[1], [0], [0], [1], [0, 0, 1, 1], [], []>} : vector<8x32xf32>, vector<32x32xf32>, vector<8x32xf32> -> vector<8x32xf32>
    %170 = arith.addf %168, %169 : vector<8x32xf32>
    %cst_95 = arith.constant dense<0.000000e+00> : vector<8x32xf32>
    %171 = tpu.matmul %162, %11, %cst_95 {dimension_numbers = #tpu.dot_dimension_numbers<[1], [0], [0], [1], [0, 0, 1, 1], [], []>} : vector<8x32xf32>, vector<32x32xf32>, vector<8x32xf32> -> vector<8x32xf32>
    %172 = arith.addf %42, %171 : vector<8x32xf32>
    %cst_96 = arith.constant dense<0.000000e+00> : vector<8x32xf32>
    %173 = tpu.matmul %150, %19, %cst_96 {dimension_numbers = #tpu.dot_dimension_numbers<[1], [0], [0], [1], [0, 0, 1, 1], [], []>} : vector<8x32xf32>, vector<32x32xf32>, vector<8x32xf32> -> vector<8x32xf32>
    %174 = arith.addf %172, %173 : vector<8x32xf32>
    %cst_97 = arith.constant dense<0.000000e+00> : vector<8x32xf32>
    %175 = tpu.matmul %162, %13, %cst_97 {dimension_numbers = #tpu.dot_dimension_numbers<[1], [0], [0], [1], [0, 0, 1, 1], [], []>} : vector<8x32xf32>, vector<32x32xf32>, vector<8x32xf32> -> vector<8x32xf32>
    %176 = arith.addf %49, %175 : vector<8x32xf32>
    %cst_98 = arith.constant dense<0.000000e+00> : vector<8x32xf32>
    %177 = tpu.matmul %150, %21, %cst_98 {dimension_numbers = #tpu.dot_dimension_numbers<[1], [0], [0], [1], [0, 0, 1, 1], [], []>} : vector<8x32xf32>, vector<32x32xf32>, vector<8x32xf32> -> vector<8x32xf32>
    %178 = arith.addf %176, %177 : vector<8x32xf32>
    %179 = arith.negf %166 : vector<8x32xf32>
    %180 = math.exp %179 : vector<8x32xf32>
    %cst_99 = arith.constant 1.000000e+00 : f32
    %181 = vector.broadcast %cst_99 : f32 to vector<8x32xf32>
    %182 = arith.addf %181, %180 : vector<8x32xf32>
    %183 = arith.divf %181, %182 : vector<8x32xf32>
    %184 = arith.negf %170 : vector<8x32xf32>
    %185 = math.exp %184 : vector<8x32xf32>
    %cst_100 = arith.constant 1.000000e+00 : f32
    %186 = vector.broadcast %cst_100 : f32 to vector<8x32xf32>
    %187 = arith.addf %186, %185 : vector<8x32xf32>
    %188 = arith.divf %186, %187 : vector<8x32xf32>
    %189 = math.tanh %174 : vector<8x32xf32>
    %190 = arith.negf %178 : vector<8x32xf32>
    %191 = math.exp %190 : vector<8x32xf32>
    %cst_101 = arith.constant 1.000000e+00 : f32
    %192 = vector.broadcast %cst_101 : f32 to vector<8x32xf32>
    %193 = arith.addf %192, %191 : vector<8x32xf32>
    %194 = arith.divf %192, %193 : vector<8x32xf32>
    %195 = arith.mulf %188, %147 : vector<8x32xf32>
    %196 = arith.mulf %183, %189 : vector<8x32xf32>
    %197 = arith.addf %195, %196 : vector<8x32xf32>
    %198 = math.tanh %197 : vector<8x32xf32>
    %199 = arith.mulf %194, %198 : vector<8x32xf32>
    %200 = arith.addf %199, %1 : vector<8x32xf32>
    %c3_i32 = arith.constant 3 : i32
    %cst_102 = arith.constant dense<0.000000e+00> : vector<8x8xf32>
    %201 = tpu.matmul %200, %5, %cst_102 {dimension_numbers = #tpu.dot_dimension_numbers<[1], [0], [0], [1], [0, 0, 1, 1], [], []>} : vector<8x32xf32>, vector<32x8xf32>, vector<8x8xf32> -> vector<8x8xf32>
    %cst_103 = arith.constant dense<0xFF800000> : vector<8xf32>
    %202 = vector.multi_reduction <maximumf>, %201, %cst_103 [1] : vector<8x8xf32> to vector<8xf32>
    %203 = vector.shape_cast %202 : vector<8xf32> to vector<8x1xf32>
    %204 = vector.broadcast %203 : vector<8x1xf32> to vector<8x8xf32>
    %205 = arith.subf %201, %204 : vector<8x8xf32>
    %206 = math.exp %205 : vector<8x8xf32>
    %cst_104 = arith.constant dense<0.000000e+00> : vector<8xf32>
    %207 = vector.multi_reduction <add>, %206, %cst_104 [1] : vector<8x8xf32> to vector<8xf32>
    %208 = vector.shape_cast %207 : vector<8xf32> to vector<8x1xf32>
    %209 = tpu.reciprocal %208 {approx = true} : vector<8x1xf32> -> vector<8x1xf32>
    %210 = vector.broadcast %209 : vector<8x1xf32> to vector<8x8xf32>
    %211 = arith.mulf %206, %210 : vector<8x8xf32>
    %cst_105 = arith.constant dense<0.000000e+00> : vector<8x32xf32>
    %212 = tpu.matmul %211, %3, %cst_105 {dimension_numbers = #tpu.dot_dimension_numbers<[1], [0], [0], [1], [0, 0, 1, 1], [], []>} : vector<8x8xf32>, vector<8x32xf32>, vector<8x32xf32> -> vector<8x32xf32>
    %cst_106 = arith.constant dense<0.000000e+00> : vector<8x32xf32>
    %213 = tpu.matmul %212, %7, %cst_106 {dimension_numbers = #tpu.dot_dimension_numbers<[1], [0], [0], [1], [0, 0, 1, 1], [], []>} : vector<8x32xf32>, vector<32x32xf32>, vector<8x32xf32> -> vector<8x32xf32>
    %214 = arith.addf %28, %213 : vector<8x32xf32>
    %cst_107 = arith.constant dense<0.000000e+00> : vector<8x32xf32>
    %215 = tpu.matmul %200, %15, %cst_107 {dimension_numbers = #tpu.dot_dimension_numbers<[1], [0], [0], [1], [0, 0, 1, 1], [], []>} : vector<8x32xf32>, vector<32x32xf32>, vector<8x32xf32> -> vector<8x32xf32>
    %216 = arith.addf %214, %215 : vector<8x32xf32>
    %cst_108 = arith.constant dense<0.000000e+00> : vector<8x32xf32>
    %217 = tpu.matmul %212, %9, %cst_108 {dimension_numbers = #tpu.dot_dimension_numbers<[1], [0], [0], [1], [0, 0, 1, 1], [], []>} : vector<8x32xf32>, vector<32x32xf32>, vector<8x32xf32> -> vector<8x32xf32>
    %218 = arith.addf %35, %217 : vector<8x32xf32>
    %cst_109 = arith.constant dense<0.000000e+00> : vector<8x32xf32>
    %219 = tpu.matmul %200, %17, %cst_109 {dimension_numbers = #tpu.dot_dimension_numbers<[1], [0], [0], [1], [0, 0, 1, 1], [], []>} : vector<8x32xf32>, vector<32x32xf32>, vector<8x32xf32> -> vector<8x32xf32>
    %220 = arith.addf %218, %219 : vector<8x32xf32>
    %cst_110 = arith.constant dense<0.000000e+00> : vector<8x32xf32>
    %221 = tpu.matmul %212, %11, %cst_110 {dimension_numbers = #tpu.dot_dimension_numbers<[1], [0], [0], [1], [0, 0, 1, 1], [], []>} : vector<8x32xf32>, vector<32x32xf32>, vector<8x32xf32> -> vector<8x32xf32>
    %222 = arith.addf %42, %221 : vector<8x32xf32>
    %cst_111 = arith.constant dense<0.000000e+00> : vector<8x32xf32>
    %223 = tpu.matmul %200, %19, %cst_111 {dimension_numbers = #tpu.dot_dimension_numbers<[1], [0], [0], [1], [0, 0, 1, 1], [], []>} : vector<8x32xf32>, vector<32x32xf32>, vector<8x32xf32> -> vector<8x32xf32>
    %224 = arith.addf %222, %223 : vector<8x32xf32>
    %cst_112 = arith.constant dense<0.000000e+00> : vector<8x32xf32>
    %225 = tpu.matmul %212, %13, %cst_112 {dimension_numbers = #tpu.dot_dimension_numbers<[1], [0], [0], [1], [0, 0, 1, 1], [], []>} : vector<8x32xf32>, vector<32x32xf32>, vector<8x32xf32> -> vector<8x32xf32>
    %226 = arith.addf %49, %225 : vector<8x32xf32>
    %cst_113 = arith.constant dense<0.000000e+00> : vector<8x32xf32>
    %227 = tpu.matmul %200, %21, %cst_113 {dimension_numbers = #tpu.dot_dimension_numbers<[1], [0], [0], [1], [0, 0, 1, 1], [], []>} : vector<8x32xf32>, vector<32x32xf32>, vector<8x32xf32> -> vector<8x32xf32>
    %228 = arith.addf %226, %227 : vector<8x32xf32>
    %229 = arith.negf %216 : vector<8x32xf32>
    %230 = math.exp %229 : vector<8x32xf32>
    %cst_114 = arith.constant 1.000000e+00 : f32
    %231 = vector.broadcast %cst_114 : f32 to vector<8x32xf32>
    %232 = arith.addf %231, %230 : vector<8x32xf32>
    %233 = arith.divf %231, %232 : vector<8x32xf32>
    %234 = arith.negf %220 : vector<8x32xf32>
    %235 = math.exp %234 : vector<8x32xf32>
    %cst_115 = arith.constant 1.000000e+00 : f32
    %236 = vector.broadcast %cst_115 : f32 to vector<8x32xf32>
    %237 = arith.addf %236, %235 : vector<8x32xf32>
    %238 = arith.divf %236, %237 : vector<8x32xf32>
    %239 = math.tanh %224 : vector<8x32xf32>
    %240 = arith.negf %228 : vector<8x32xf32>
    %241 = math.exp %240 : vector<8x32xf32>
    %cst_116 = arith.constant 1.000000e+00 : f32
    %242 = vector.broadcast %cst_116 : f32 to vector<8x32xf32>
    %243 = arith.addf %242, %241 : vector<8x32xf32>
    %244 = arith.divf %242, %243 : vector<8x32xf32>
    %245 = arith.mulf %238, %197 : vector<8x32xf32>
    %246 = arith.mulf %233, %239 : vector<8x32xf32>
    %247 = arith.addf %245, %246 : vector<8x32xf32>
    %248 = math.tanh %247 : vector<8x32xf32>
    %249 = arith.mulf %244, %248 : vector<8x32xf32>
    %250 = arith.addf %249, %1 : vector<8x32xf32>
    %c4_i32 = arith.constant 4 : i32
    %cst_117 = arith.constant dense<0.000000e+00> : vector<8x8xf32>
    %251 = tpu.matmul %250, %5, %cst_117 {dimension_numbers = #tpu.dot_dimension_numbers<[1], [0], [0], [1], [0, 0, 1, 1], [], []>} : vector<8x32xf32>, vector<32x8xf32>, vector<8x8xf32> -> vector<8x8xf32>
    %cst_118 = arith.constant dense<0xFF800000> : vector<8xf32>
    %252 = vector.multi_reduction <maximumf>, %251, %cst_118 [1] : vector<8x8xf32> to vector<8xf32>
    %253 = vector.shape_cast %252 : vector<8xf32> to vector<8x1xf32>
    %254 = vector.broadcast %253 : vector<8x1xf32> to vector<8x8xf32>
    %255 = arith.subf %251, %254 : vector<8x8xf32>
    %256 = math.exp %255 : vector<8x8xf32>
    %cst_119 = arith.constant dense<0.000000e+00> : vector<8xf32>
    %257 = vector.multi_reduction <add>, %256, %cst_119 [1] : vector<8x8xf32> to vector<8xf32>
    %258 = vector.shape_cast %257 : vector<8xf32> to vector<8x1xf32>
    %259 = tpu.reciprocal %258 {approx = true} : vector<8x1xf32> -> vector<8x1xf32>
    %260 = vector.broadcast %259 : vector<8x1xf32> to vector<8x8xf32>
    %261 = arith.mulf %256, %260 : vector<8x8xf32>
    %cst_120 = arith.constant dense<0.000000e+00> : vector<8x32xf32>
    %262 = tpu.matmul %261, %3, %cst_120 {dimension_numbers = #tpu.dot_dimension_numbers<[1], [0], [0], [1], [0, 0, 1, 1], [], []>} : vector<8x8xf32>, vector<8x32xf32>, vector<8x32xf32> -> vector<8x32xf32>
    %cst_121 = arith.constant dense<0.000000e+00> : vector<8x32xf32>
    %263 = tpu.matmul %262, %7, %cst_121 {dimension_numbers = #tpu.dot_dimension_numbers<[1], [0], [0], [1], [0, 0, 1, 1], [], []>} : vector<8x32xf32>, vector<32x32xf32>, vector<8x32xf32> -> vector<8x32xf32>
    %264 = arith.addf %28, %263 : vector<8x32xf32>
    %cst_122 = arith.constant dense<0.000000e+00> : vector<8x32xf32>
    %265 = tpu.matmul %250, %15, %cst_122 {dimension_numbers = #tpu.dot_dimension_numbers<[1], [0], [0], [1], [0, 0, 1, 1], [], []>} : vector<8x32xf32>, vector<32x32xf32>, vector<8x32xf32> -> vector<8x32xf32>
    %266 = arith.addf %264, %265 : vector<8x32xf32>
    %cst_123 = arith.constant dense<0.000000e+00> : vector<8x32xf32>
    %267 = tpu.matmul %262, %9, %cst_123 {dimension_numbers = #tpu.dot_dimension_numbers<[1], [0], [0], [1], [0, 0, 1, 1], [], []>} : vector<8x32xf32>, vector<32x32xf32>, vector<8x32xf32> -> vector<8x32xf32>
    %268 = arith.addf %35, %267 : vector<8x32xf32>
    %cst_124 = arith.constant dense<0.000000e+00> : vector<8x32xf32>
    %269 = tpu.matmul %250, %17, %cst_124 {dimension_numbers = #tpu.dot_dimension_numbers<[1], [0], [0], [1], [0, 0, 1, 1], [], []>} : vector<8x32xf32>, vector<32x32xf32>, vector<8x32xf32> -> vector<8x32xf32>
    %270 = arith.addf %268, %269 : vector<8x32xf32>
    %cst_125 = arith.constant dense<0.000000e+00> : vector<8x32xf32>
    %271 = tpu.matmul %262, %11, %cst_125 {dimension_numbers = #tpu.dot_dimension_numbers<[1], [0], [0], [1], [0, 0, 1, 1], [], []>} : vector<8x32xf32>, vector<32x32xf32>, vector<8x32xf32> -> vector<8x32xf32>
    %272 = arith.addf %42, %271 : vector<8x32xf32>
    %cst_126 = arith.constant dense<0.000000e+00> : vector<8x32xf32>
    %273 = tpu.matmul %250, %19, %cst_126 {dimension_numbers = #tpu.dot_dimension_numbers<[1], [0], [0], [1], [0, 0, 1, 1], [], []>} : vector<8x32xf32>, vector<32x32xf32>, vector<8x32xf32> -> vector<8x32xf32>
    %274 = arith.addf %272, %273 : vector<8x32xf32>
    %cst_127 = arith.constant dense<0.000000e+00> : vector<8x32xf32>
    %275 = tpu.matmul %262, %13, %cst_127 {dimension_numbers = #tpu.dot_dimension_numbers<[1], [0], [0], [1], [0, 0, 1, 1], [], []>} : vector<8x32xf32>, vector<32x32xf32>, vector<8x32xf32> -> vector<8x32xf32>
    %276 = arith.addf %49, %275 : vector<8x32xf32>
    %cst_128 = arith.constant dense<0.000000e+00> : vector<8x32xf32>
    %277 = tpu.matmul %250, %21, %cst_128 {dimension_numbers = #tpu.dot_dimension_numbers<[1], [0], [0], [1], [0, 0, 1, 1], [], []>} : vector<8x32xf32>, vector<32x32xf32>, vector<8x32xf32> -> vector<8x32xf32>
    %278 = arith.addf %276, %277 : vector<8x32xf32>
    %279 = arith.negf %266 : vector<8x32xf32>
    %280 = math.exp %279 : vector<8x32xf32>
    %cst_129 = arith.constant 1.000000e+00 : f32
    %281 = vector.broadcast %cst_129 : f32 to vector<8x32xf32>
    %282 = arith.addf %281, %280 : vector<8x32xf32>
    %283 = arith.divf %281, %282 : vector<8x32xf32>
    %284 = arith.negf %270 : vector<8x32xf32>
    %285 = math.exp %284 : vector<8x32xf32>
    %cst_130 = arith.constant 1.000000e+00 : f32
    %286 = vector.broadcast %cst_130 : f32 to vector<8x32xf32>
    %287 = arith.addf %286, %285 : vector<8x32xf32>
    %288 = arith.divf %286, %287 : vector<8x32xf32>
    %289 = math.tanh %274 : vector<8x32xf32>
    %290 = arith.negf %278 : vector<8x32xf32>
    %291 = math.exp %290 : vector<8x32xf32>
    %cst_131 = arith.constant 1.000000e+00 : f32
    %292 = vector.broadcast %cst_131 : f32 to vector<8x32xf32>
    %293 = arith.addf %292, %291 : vector<8x32xf32>
    %294 = arith.divf %292, %293 : vector<8x32xf32>
    %295 = arith.mulf %288, %247 : vector<8x32xf32>
    %296 = arith.mulf %283, %289 : vector<8x32xf32>
    %297 = arith.addf %295, %296 : vector<8x32xf32>
    %298 = math.tanh %297 : vector<8x32xf32>
    %299 = arith.mulf %294, %298 : vector<8x32xf32>
    %300 = arith.addf %299, %1 : vector<8x32xf32>
    %c5_i32 = arith.constant 5 : i32
    %cst_132 = arith.constant dense<0.000000e+00> : vector<8x8xf32>
    %301 = tpu.matmul %300, %5, %cst_132 {dimension_numbers = #tpu.dot_dimension_numbers<[1], [0], [0], [1], [0, 0, 1, 1], [], []>} : vector<8x32xf32>, vector<32x8xf32>, vector<8x8xf32> -> vector<8x8xf32>
    %cst_133 = arith.constant dense<0xFF800000> : vector<8xf32>
    %302 = vector.multi_reduction <maximumf>, %301, %cst_133 [1] : vector<8x8xf32> to vector<8xf32>
    %303 = vector.shape_cast %302 : vector<8xf32> to vector<8x1xf32>
    %304 = vector.broadcast %303 : vector<8x1xf32> to vector<8x8xf32>
    %305 = arith.subf %301, %304 : vector<8x8xf32>
    %306 = math.exp %305 : vector<8x8xf32>
    %cst_134 = arith.constant dense<0.000000e+00> : vector<8xf32>
    %307 = vector.multi_reduction <add>, %306, %cst_134 [1] : vector<8x8xf32> to vector<8xf32>
    %308 = vector.shape_cast %307 : vector<8xf32> to vector<8x1xf32>
    %309 = tpu.reciprocal %308 {approx = true} : vector<8x1xf32> -> vector<8x1xf32>
    %310 = vector.broadcast %309 : vector<8x1xf32> to vector<8x8xf32>
    %311 = arith.mulf %306, %310 : vector<8x8xf32>
    %cst_135 = arith.constant dense<0.000000e+00> : vector<8x32xf32>
    %312 = tpu.matmul %311, %3, %cst_135 {dimension_numbers = #tpu.dot_dimension_numbers<[1], [0], [0], [1], [0, 0, 1, 1], [], []>} : vector<8x8xf32>, vector<8x32xf32>, vector<8x32xf32> -> vector<8x32xf32>
    %cst_136 = arith.constant dense<0.000000e+00> : vector<8x32xf32>
    %313 = tpu.matmul %312, %7, %cst_136 {dimension_numbers = #tpu.dot_dimension_numbers<[1], [0], [0], [1], [0, 0, 1, 1], [], []>} : vector<8x32xf32>, vector<32x32xf32>, vector<8x32xf32> -> vector<8x32xf32>
    %314 = arith.addf %28, %313 : vector<8x32xf32>
    %cst_137 = arith.constant dense<0.000000e+00> : vector<8x32xf32>
    %315 = tpu.matmul %300, %15, %cst_137 {dimension_numbers = #tpu.dot_dimension_numbers<[1], [0], [0], [1], [0, 0, 1, 1], [], []>} : vector<8x32xf32>, vector<32x32xf32>, vector<8x32xf32> -> vector<8x32xf32>
    %316 = arith.addf %314, %315 : vector<8x32xf32>
    %cst_138 = arith.constant dense<0.000000e+00> : vector<8x32xf32>
    %317 = tpu.matmul %312, %9, %cst_138 {dimension_numbers = #tpu.dot_dimension_numbers<[1], [0], [0], [1], [0, 0, 1, 1], [], []>} : vector<8x32xf32>, vector<32x32xf32>, vector<8x32xf32> -> vector<8x32xf32>
    %318 = arith.addf %35, %317 : vector<8x32xf32>
    %cst_139 = arith.constant dense<0.000000e+00> : vector<8x32xf32>
    %319 = tpu.matmul %300, %17, %cst_139 {dimension_numbers = #tpu.dot_dimension_numbers<[1], [0], [0], [1], [0, 0, 1, 1], [], []>} : vector<8x32xf32>, vector<32x32xf32>, vector<8x32xf32> -> vector<8x32xf32>
    %320 = arith.addf %318, %319 : vector<8x32xf32>
    %cst_140 = arith.constant dense<0.000000e+00> : vector<8x32xf32>
    %321 = tpu.matmul %312, %11, %cst_140 {dimension_numbers = #tpu.dot_dimension_numbers<[1], [0], [0], [1], [0, 0, 1, 1], [], []>} : vector<8x32xf32>, vector<32x32xf32>, vector<8x32xf32> -> vector<8x32xf32>
    %322 = arith.addf %42, %321 : vector<8x32xf32>
    %cst_141 = arith.constant dense<0.000000e+00> : vector<8x32xf32>
    %323 = tpu.matmul %300, %19, %cst_141 {dimension_numbers = #tpu.dot_dimension_numbers<[1], [0], [0], [1], [0, 0, 1, 1], [], []>} : vector<8x32xf32>, vector<32x32xf32>, vector<8x32xf32> -> vector<8x32xf32>
    %324 = arith.addf %322, %323 : vector<8x32xf32>
    %cst_142 = arith.constant dense<0.000000e+00> : vector<8x32xf32>
    %325 = tpu.matmul %312, %13, %cst_142 {dimension_numbers = #tpu.dot_dimension_numbers<[1], [0], [0], [1], [0, 0, 1, 1], [], []>} : vector<8x32xf32>, vector<32x32xf32>, vector<8x32xf32> -> vector<8x32xf32>
    %326 = arith.addf %49, %325 : vector<8x32xf32>
    %cst_143 = arith.constant dense<0.000000e+00> : vector<8x32xf32>
    %327 = tpu.matmul %300, %21, %cst_143 {dimension_numbers = #tpu.dot_dimension_numbers<[1], [0], [0], [1], [0, 0, 1, 1], [], []>} : vector<8x32xf32>, vector<32x32xf32>, vector<8x32xf32> -> vector<8x32xf32>
    %328 = arith.addf %326, %327 : vector<8x32xf32>
    %329 = arith.negf %316 : vector<8x32xf32>
    %330 = math.exp %329 : vector<8x32xf32>
    %cst_144 = arith.constant 1.000000e+00 : f32
    %331 = vector.broadcast %cst_144 : f32 to vector<8x32xf32>
    %332 = arith.addf %331, %330 : vector<8x32xf32>
    %333 = arith.divf %331, %332 : vector<8x32xf32>
    %334 = arith.negf %320 : vector<8x32xf32>
    %335 = math.exp %334 : vector<8x32xf32>
    %cst_145 = arith.constant 1.000000e+00 : f32
    %336 = vector.broadcast %cst_145 : f32 to vector<8x32xf32>
    %337 = arith.addf %336, %335 : vector<8x32xf32>
    %338 = arith.divf %336, %337 : vector<8x32xf32>
    %339 = math.tanh %324 : vector<8x32xf32>
    %340 = arith.negf %328 : vector<8x32xf32>
    %341 = math.exp %340 : vector<8x32xf32>
    %cst_146 = arith.constant 1.000000e+00 : f32
    %342 = vector.broadcast %cst_146 : f32 to vector<8x32xf32>
    %343 = arith.addf %342, %341 : vector<8x32xf32>
    %344 = arith.divf %342, %343 : vector<8x32xf32>
    %345 = arith.mulf %338, %297 : vector<8x32xf32>
    %346 = arith.mulf %333, %339 : vector<8x32xf32>
    %347 = arith.addf %345, %346 : vector<8x32xf32>
    %348 = math.tanh %347 : vector<8x32xf32>
    %349 = arith.mulf %344, %348 : vector<8x32xf32>
    %350 = arith.addf %349, %1 : vector<8x32xf32>
    %c6_i32 = arith.constant 6 : i32
    %cst_147 = arith.constant dense<0.000000e+00> : vector<8x8xf32>
    %351 = tpu.matmul %350, %5, %cst_147 {dimension_numbers = #tpu.dot_dimension_numbers<[1], [0], [0], [1], [0, 0, 1, 1], [], []>} : vector<8x32xf32>, vector<32x8xf32>, vector<8x8xf32> -> vector<8x8xf32>
    %cst_148 = arith.constant dense<0xFF800000> : vector<8xf32>
    %352 = vector.multi_reduction <maximumf>, %351, %cst_148 [1] : vector<8x8xf32> to vector<8xf32>
    %353 = vector.shape_cast %352 : vector<8xf32> to vector<8x1xf32>
    %354 = vector.broadcast %353 : vector<8x1xf32> to vector<8x8xf32>
    %355 = arith.subf %351, %354 : vector<8x8xf32>
    %356 = math.exp %355 : vector<8x8xf32>
    %cst_149 = arith.constant dense<0.000000e+00> : vector<8xf32>
    %357 = vector.multi_reduction <add>, %356, %cst_149 [1] : vector<8x8xf32> to vector<8xf32>
    %358 = vector.shape_cast %357 : vector<8xf32> to vector<8x1xf32>
    %359 = tpu.reciprocal %358 {approx = true} : vector<8x1xf32> -> vector<8x1xf32>
    %360 = vector.broadcast %359 : vector<8x1xf32> to vector<8x8xf32>
    %361 = arith.mulf %356, %360 : vector<8x8xf32>
    %cst_150 = arith.constant dense<0.000000e+00> : vector<8x32xf32>
    %362 = tpu.matmul %361, %3, %cst_150 {dimension_numbers = #tpu.dot_dimension_numbers<[1], [0], [0], [1], [0, 0, 1, 1], [], []>} : vector<8x8xf32>, vector<8x32xf32>, vector<8x32xf32> -> vector<8x32xf32>
    %cst_151 = arith.constant dense<0.000000e+00> : vector<8x32xf32>
    %363 = tpu.matmul %362, %7, %cst_151 {dimension_numbers = #tpu.dot_dimension_numbers<[1], [0], [0], [1], [0, 0, 1, 1], [], []>} : vector<8x32xf32>, vector<32x32xf32>, vector<8x32xf32> -> vector<8x32xf32>
    %364 = arith.addf %28, %363 : vector<8x32xf32>
    %cst_152 = arith.constant dense<0.000000e+00> : vector<8x32xf32>
    %365 = tpu.matmul %350, %15, %cst_152 {dimension_numbers = #tpu.dot_dimension_numbers<[1], [0], [0], [1], [0, 0, 1, 1], [], []>} : vector<8x32xf32>, vector<32x32xf32>, vector<8x32xf32> -> vector<8x32xf32>
    %366 = arith.addf %364, %365 : vector<8x32xf32>
    %cst_153 = arith.constant dense<0.000000e+00> : vector<8x32xf32>
    %367 = tpu.matmul %362, %9, %cst_153 {dimension_numbers = #tpu.dot_dimension_numbers<[1], [0], [0], [1], [0, 0, 1, 1], [], []>} : vector<8x32xf32>, vector<32x32xf32>, vector<8x32xf32> -> vector<8x32xf32>
    %368 = arith.addf %35, %367 : vector<8x32xf32>
    %cst_154 = arith.constant dense<0.000000e+00> : vector<8x32xf32>
    %369 = tpu.matmul %350, %17, %cst_154 {dimension_numbers = #tpu.dot_dimension_numbers<[1], [0], [0], [1], [0, 0, 1, 1], [], []>} : vector<8x32xf32>, vector<32x32xf32>, vector<8x32xf32> -> vector<8x32xf32>
    %370 = arith.addf %368, %369 : vector<8x32xf32>
    %cst_155 = arith.constant dense<0.000000e+00> : vector<8x32xf32>
    %371 = tpu.matmul %362, %11, %cst_155 {dimension_numbers = #tpu.dot_dimension_numbers<[1], [0], [0], [1], [0, 0, 1, 1], [], []>} : vector<8x32xf32>, vector<32x32xf32>, vector<8x32xf32> -> vector<8x32xf32>
    %372 = arith.addf %42, %371 : vector<8x32xf32>
    %cst_156 = arith.constant dense<0.000000e+00> : vector<8x32xf32>
    %373 = tpu.matmul %350, %19, %cst_156 {dimension_numbers = #tpu.dot_dimension_numbers<[1], [0], [0], [1], [0, 0, 1, 1], [], []>} : vector<8x32xf32>, vector<32x32xf32>, vector<8x32xf32> -> vector<8x32xf32>
    %374 = arith.addf %372, %373 : vector<8x32xf32>
    %cst_157 = arith.constant dense<0.000000e+00> : vector<8x32xf32>
    %375 = tpu.matmul %362, %13, %cst_157 {dimension_numbers = #tpu.dot_dimension_numbers<[1], [0], [0], [1], [0, 0, 1, 1], [], []>} : vector<8x32xf32>, vector<32x32xf32>, vector<8x32xf32> -> vector<8x32xf32>
    %376 = arith.addf %49, %375 : vector<8x32xf32>
    %cst_158 = arith.constant dense<0.000000e+00> : vector<8x32xf32>
    %377 = tpu.matmul %350, %21, %cst_158 {dimension_numbers = #tpu.dot_dimension_numbers<[1], [0], [0], [1], [0, 0, 1, 1], [], []>} : vector<8x32xf32>, vector<32x32xf32>, vector<8x32xf32> -> vector<8x32xf32>
    %378 = arith.addf %376, %377 : vector<8x32xf32>
    %379 = arith.negf %366 : vector<8x32xf32>
    %380 = math.exp %379 : vector<8x32xf32>
    %cst_159 = arith.constant 1.000000e+00 : f32
    %381 = vector.broadcast %cst_159 : f32 to vector<8x32xf32>
    %382 = arith.addf %381, %380 : vector<8x32xf32>
    %383 = arith.divf %381, %382 : vector<8x32xf32>
    %384 = arith.negf %370 : vector<8x32xf32>
    %385 = math.exp %384 : vector<8x32xf32>
    %cst_160 = arith.constant 1.000000e+00 : f32
    %386 = vector.broadcast %cst_160 : f32 to vector<8x32xf32>
    %387 = arith.addf %386, %385 : vector<8x32xf32>
    %388 = arith.divf %386, %387 : vector<8x32xf32>
    %389 = math.tanh %374 : vector<8x32xf32>
    %390 = arith.negf %378 : vector<8x32xf32>
    %391 = math.exp %390 : vector<8x32xf32>
    %cst_161 = arith.constant 1.000000e+00 : f32
    %392 = vector.broadcast %cst_161 : f32 to vector<8x32xf32>
    %393 = arith.addf %392, %391 : vector<8x32xf32>
    %394 = arith.divf %392, %393 : vector<8x32xf32>
    %395 = arith.mulf %388, %347 : vector<8x32xf32>
    %396 = arith.mulf %383, %389 : vector<8x32xf32>
    %397 = arith.addf %395, %396 : vector<8x32xf32>
    %398 = math.tanh %397 : vector<8x32xf32>
    %399 = arith.mulf %394, %398 : vector<8x32xf32>
    %400 = arith.addf %399, %1 : vector<8x32xf32>
    %c7_i32 = arith.constant 7 : i32
    %cst_162 = arith.constant dense<0.000000e+00> : vector<8x8xf32>
    %401 = tpu.matmul %400, %5, %cst_162 {dimension_numbers = #tpu.dot_dimension_numbers<[1], [0], [0], [1], [0, 0, 1, 1], [], []>} : vector<8x32xf32>, vector<32x8xf32>, vector<8x8xf32> -> vector<8x8xf32>
    %cst_163 = arith.constant dense<0xFF800000> : vector<8xf32>
    %402 = vector.multi_reduction <maximumf>, %401, %cst_163 [1] : vector<8x8xf32> to vector<8xf32>
    %403 = vector.shape_cast %402 : vector<8xf32> to vector<8x1xf32>
    %404 = vector.broadcast %403 : vector<8x1xf32> to vector<8x8xf32>
    %405 = arith.subf %401, %404 : vector<8x8xf32>
    %406 = math.exp %405 : vector<8x8xf32>
    %cst_164 = arith.constant dense<0.000000e+00> : vector<8xf32>
    %407 = vector.multi_reduction <add>, %406, %cst_164 [1] : vector<8x8xf32> to vector<8xf32>
    %408 = vector.shape_cast %407 : vector<8xf32> to vector<8x1xf32>
    %409 = tpu.reciprocal %408 {approx = true} : vector<8x1xf32> -> vector<8x1xf32>
    %410 = vector.broadcast %409 : vector<8x1xf32> to vector<8x8xf32>
    %411 = arith.mulf %406, %410 : vector<8x8xf32>
    %cst_165 = arith.constant dense<0.000000e+00> : vector<8x32xf32>
    %412 = tpu.matmul %411, %3, %cst_165 {dimension_numbers = #tpu.dot_dimension_numbers<[1], [0], [0], [1], [0, 0, 1, 1], [], []>} : vector<8x8xf32>, vector<8x32xf32>, vector<8x32xf32> -> vector<8x32xf32>
    %cst_166 = arith.constant dense<0.000000e+00> : vector<8x32xf32>
    %413 = tpu.matmul %412, %7, %cst_166 {dimension_numbers = #tpu.dot_dimension_numbers<[1], [0], [0], [1], [0, 0, 1, 1], [], []>} : vector<8x32xf32>, vector<32x32xf32>, vector<8x32xf32> -> vector<8x32xf32>
    %414 = arith.addf %28, %413 : vector<8x32xf32>
    %cst_167 = arith.constant dense<0.000000e+00> : vector<8x32xf32>
    %415 = tpu.matmul %400, %15, %cst_167 {dimension_numbers = #tpu.dot_dimension_numbers<[1], [0], [0], [1], [0, 0, 1, 1], [], []>} : vector<8x32xf32>, vector<32x32xf32>, vector<8x32xf32> -> vector<8x32xf32>
    %416 = arith.addf %414, %415 : vector<8x32xf32>
    %cst_168 = arith.constant dense<0.000000e+00> : vector<8x32xf32>
    %417 = tpu.matmul %412, %9, %cst_168 {dimension_numbers = #tpu.dot_dimension_numbers<[1], [0], [0], [1], [0, 0, 1, 1], [], []>} : vector<8x32xf32>, vector<32x32xf32>, vector<8x32xf32> -> vector<8x32xf32>
    %418 = arith.addf %35, %417 : vector<8x32xf32>
    %cst_169 = arith.constant dense<0.000000e+00> : vector<8x32xf32>
    %419 = tpu.matmul %400, %17, %cst_169 {dimension_numbers = #tpu.dot_dimension_numbers<[1], [0], [0], [1], [0, 0, 1, 1], [], []>} : vector<8x32xf32>, vector<32x32xf32>, vector<8x32xf32> -> vector<8x32xf32>
    %420 = arith.addf %418, %419 : vector<8x32xf32>
    %cst_170 = arith.constant dense<0.000000e+00> : vector<8x32xf32>
    %421 = tpu.matmul %412, %11, %cst_170 {dimension_numbers = #tpu.dot_dimension_numbers<[1], [0], [0], [1], [0, 0, 1, 1], [], []>} : vector<8x32xf32>, vector<32x32xf32>, vector<8x32xf32> -> vector<8x32xf32>
    %422 = arith.addf %42, %421 : vector<8x32xf32>
    %cst_171 = arith.constant dense<0.000000e+00> : vector<8x32xf32>
    %423 = tpu.matmul %400, %19, %cst_171 {dimension_numbers = #tpu.dot_dimension_numbers<[1], [0], [0], [1], [0, 0, 1, 1], [], []>} : vector<8x32xf32>, vector<32x32xf32>, vector<8x32xf32> -> vector<8x32xf32>
    %424 = arith.addf %422, %423 : vector<8x32xf32>
    %cst_172 = arith.constant dense<0.000000e+00> : vector<8x32xf32>
    %425 = tpu.matmul %412, %13, %cst_172 {dimension_numbers = #tpu.dot_dimension_numbers<[1], [0], [0], [1], [0, 0, 1, 1], [], []>} : vector<8x32xf32>, vector<32x32xf32>, vector<8x32xf32> -> vector<8x32xf32>
    %426 = arith.addf %49, %425 : vector<8x32xf32>
    %cst_173 = arith.constant dense<0.000000e+00> : vector<8x32xf32>
    %427 = tpu.matmul %400, %21, %cst_173 {dimension_numbers = #tpu.dot_dimension_numbers<[1], [0], [0], [1], [0, 0, 1, 1], [], []>} : vector<8x32xf32>, vector<32x32xf32>, vector<8x32xf32> -> vector<8x32xf32>
    %428 = arith.addf %426, %427 : vector<8x32xf32>
    %429 = arith.negf %416 : vector<8x32xf32>
    %430 = math.exp %429 : vector<8x32xf32>
    %cst_174 = arith.constant 1.000000e+00 : f32
    %431 = vector.broadcast %cst_174 : f32 to vector<8x32xf32>
    %432 = arith.addf %431, %430 : vector<8x32xf32>
    %433 = arith.divf %431, %432 : vector<8x32xf32>
    %434 = arith.negf %420 : vector<8x32xf32>
    %435 = math.exp %434 : vector<8x32xf32>
    %cst_175 = arith.constant 1.000000e+00 : f32
    %436 = vector.broadcast %cst_175 : f32 to vector<8x32xf32>
    %437 = arith.addf %436, %435 : vector<8x32xf32>
    %438 = arith.divf %436, %437 : vector<8x32xf32>
    %439 = math.tanh %424 : vector<8x32xf32>
    %440 = arith.negf %428 : vector<8x32xf32>
    %441 = math.exp %440 : vector<8x32xf32>
    %cst_176 = arith.constant 1.000000e+00 : f32
    %442 = vector.broadcast %cst_176 : f32 to vector<8x32xf32>
    %443 = arith.addf %442, %441 : vector<8x32xf32>
    %444 = arith.divf %442, %443 : vector<8x32xf32>
    %445 = arith.mulf %438, %397 : vector<8x32xf32>
    %446 = arith.mulf %433, %439 : vector<8x32xf32>
    %447 = arith.addf %445, %446 : vector<8x32xf32>
    %448 = math.tanh %447 : vector<8x32xf32>
    %449 = arith.mulf %444, %448 : vector<8x32xf32>
    %450 = arith.addf %449, %1 : vector<8x32xf32>
    %c0_177 = arith.constant 0 : index
    %c0_178 = arith.constant 0 : index
    %c0_179 = arith.constant 0 : index
    %451 = vector.load %arg8[%c0_177, %c0_178, %c0_179] : memref<1x8x32xf32, #tpu.memory_space<vmem>>, vector<1x8x32xf32>
    %452 = vector.shape_cast %451 : vector<1x8x32xf32> to vector<8x32xf32>
    %453 = vector.shape_cast %450 : vector<8x32xf32> to vector<1x8x32xf32>
    tpu.vector_store %arg8[%c0_177, %c0_178, %c0_179], %453 {strides = array<i32>} : memref<1x8x32xf32, #tpu.memory_space<vmem>>, vector<1x8x32xf32>,
    return
  }
  func.func @transform_0(%arg0: i32) -> (i32, i32, i32) {
    %c0_i32 = arith.constant 0 : i32
    %c0_i32_0 = arith.constant 0 : i32
    %c0_i32_1 = arith.constant 0 : i32
    return %arg0, %c0_i32, %c0_i32_0 : i32, i32, i32
  }
  func.func @transform_1(%arg0: i32) -> (i32, i32, i32) {
    %c0_i32 = arith.constant 0 : i32
    %c0_i32_0 = arith.constant 0 : i32
    %c0_i32_1 = arith.constant 0 : i32
    return %arg0, %c0_i32, %c0_i32_0 : i32, i32, i32
  }
  func.func @transform_2(%arg0: i32) -> (i32, i32, i32) {
    %c0_i32 = arith.constant 0 : i32
    %c0_i32_0 = arith.constant 0 : i32
    %c0_i32_1 = arith.constant 0 : i32
    return %arg0, %c0_i32, %c0_i32_0 : i32, i32, i32
  }
  func.func @transform_3(%arg0: i32) -> (i32, i32, i32) {
    %c0_i32 = arith.constant 0 : i32
    %c0_i32_0 = arith.constant 0 : i32
    %c0_i32_1 = arith.constant 0 : i32
    %c0_i32_2 = arith.constant 0 : i32
    return %c0_i32, %c0_i32_0, %c0_i32_1 : i32, i32, i32
  }
  func.func @transform_4(%arg0: i32) -> (i32, i32, i32) {
    %c0_i32 = arith.constant 0 : i32
    %c0_i32_0 = arith.constant 0 : i32
    %c0_i32_1 = arith.constant 0 : i32
    %c0_i32_2 = arith.constant 0 : i32
    return %c0_i32, %c0_i32_0, %c0_i32_1 : i32, i32, i32
  }
  func.func @transform_5(%arg0: i32) -> (i32, i32, i32) {
    %c0_i32 = arith.constant 0 : i32
    %c0_i32_0 = arith.constant 0 : i32
    %c0_i32_1 = arith.constant 0 : i32
    %c0_i32_2 = arith.constant 0 : i32
    return %c0_i32, %c0_i32_0, %c0_i32_1 : i32, i32, i32
  }
  func.func @transform_6(%arg0: i32) -> (i32, i32, i32) {
    %c0_i32 = arith.constant 0 : i32
    %c0_i32_0 = arith.constant 0 : i32
    %c0_i32_1 = arith.constant 0 : i32
    %c0_i32_2 = arith.constant 0 : i32
    return %c0_i32, %c0_i32_0, %c0_i32_1 : i32, i32, i32
  }
  func.func @transform_7(%arg0: i32) -> (i32, i32, i32) {
    %c0_i32 = arith.constant 0 : i32
    %c0_i32_0 = arith.constant 0 : i32
    %c0_i32_1 = arith.constant 0 : i32
    return %arg0, %c0_i32, %c0_i32_0 : i32, i32, i32
  }
}

</mosaic_0001>

<bundles_post_ra>
// kernel: fully_contextual_embedding_batched.1
= control target key start
LH: loop header
LB: loop body
LE: loop exit
PB: predicated region body
PF: predicated region fallthrough
CT: control target
= control target key end

     0   :  { %12 = vsyncpa [#allocation3], 0  ;;  %s10159_s0 = inlined_call_operand.vmem [shape: f32[2,8,32], index: 0, kind: input, shape index: {}]   ;;  %s10160_s1 = inlined_call_operand.vmem [shape: f32[2,8,32], index: 1, kind: input, shape index: {}]   ;;  %s10161_s2 = inlined_call_operand.vmem [shape: f32[2,32,8], index: 2, kind: input, shape index: {}]   ;;  %s10162_s3 = inlined_call_operand.vmem [shape: f32[4,32,32], index: 3, kind: input, shape index: {}]   ;;  %s10163_s4 = inlined_call_operand.vmem [shape: f32[4,32,32], index: 4, kind: input, shape index: {}]   ;;  %s10164_s5 = inlined_call_operand.vmem [shape: f32[4,32,32], index: 5, kind: input, shape index: {}]   ;;  %s10165_s6 = inlined_call_operand.vmem [shape: f32[4,1,32], index: 6, kind: input, shape index: {}]   ;;  %s10166_s7 = inlined_call_operand.hbm [shape: f32[2,8,32], index: 7, kind: output, shape index: {}]  }
   0x1   :  { %14 = vsyncpa [#allocation3 + $0x1], 0  ;;  %s9110_s24 = smov 0   ;;  %s9112_s25 = smov 0  }
   0x2   :  { %s9114_s26 = smov 0   ;;  %s9116_s27 = smov 0  }
   0x3 LB: > { %s9131_s28 = sadd.s32 4294967295, %s9064_s27   ;;  %s6809_s29 = sadd.s32 4294967294, %s9064_s27   ;;  %s9064_s27 = sphi %s9116_s27, %s10172_s27   ;;  %s9060_s26 = sphi %s9114_s26, %s10171_s26   ;;  %s9056_s25 = sphi %s9112_s25, %s10170_s25   ;;  %s9052_s24 = sphi %s9110_s24, %s10169_s24  }
   0x4   : > { %s9135_s30 = sadd.s32 1, %s9064_s27   ;;  %s189_s8 = sadd.s32 1, %s9060_s26 }
   0x5   : > { %s186_s9 = ssub.s32 %s9064_s27, %s9135_s30  ;;  %p199_p0 = scmp.ne.s32.totalorder %s9060_s26, %s9056_s25 }
   0x6   : > { %p187_p1 = scmp.eq.s32.totalorder %s186_s9, 0  ;;  %p200_p2 = scmp.eq.s32.totalorder %s9131_s28, 1 }
   0x7   : > { %p205_p3 = scmp.ne.s32.totalorder %s9056_s25, %s9052_s24  ;;  %p206_p4 = scmp.eq.s32.totalorder %s6809_s29, 1 }
   0x8   : > { %s9146_s10 = scalar_select %p187_p1, %s9060_s26, %s189_s8  }
   0x9   : > { %p9148_p5 = por %p200_p2, %p199_p0  ;;  %p9152_p6 = por %p206_p4, %p205_p3 }
   0xa   : > { %p6812_p7 = scmp.ge.s32.totalorder %s9064_s27, 1  ;;  %p258_p8 = scmp.lt.s32.totalorder %s9064_s27, 3 }
   0xc   : > { %p259_p9 = pnand %p6812_p7, %p258_p8 }
   0xd   : > { %v355_v0 = vld [vmem:[%s10162_s3] sm:$0xff] (!%p259_p9)  ;;  %v356_v1 = vld [vmem:[%s10162_s3 + $0x8] sm:$0xff] (!%p259_p9)  ;;  %v357_v2 = vld [vmem:[%s10162_s3 + $0x10] sm:$0xff] (!%p259_p9)  ;;  %v9066_v3 = vmov (!%p259_p9), 0.0|0.0   ;;  %vm9067_vm0 = vmmov (!%p259_p9), 0   ;;  %v9068_v6 = vmov (!%p259_p9), 0.0  }
   0xe   : > { %262 = sbr.rel (%p259_p9) target bundleno = 8120 (0x1fb8), region = 48  ;;  %8246 = vmatprep.subr.bf16.mxu0 (!%p259_p9), %v9066_v3  ;;  %v8247_v4 = vpack.c.bf16 (!%p259_p9), %v356_v1, %v355_v0  ;;  %v358_v5 = vld [vmem:[%s10162_s3 + $0x18] sm:$0xff] (!%p259_p9)  ;;  %7378 = vmatprep.mubr.msk.f32.mxu0 (!%p259_p9), %vm9067_vm0, %v9068_v6  ;;  %p298_p10 = scmp.lt.s32.totalorder (!%p259_p9), %s9131_s28, 1  ;;  %v6851_v8 = vld [vmem:[%s10162_s3 + $0x40] sm:$0xff] (!%p259_p9)  ;;  %v6852_v9 = vld [vmem:[%s10162_s3 + $0x48] sm:$0xff] (!%p259_p9)  ;;  %vm366_vm1 = vcmask (!%p259_p9), 261120  }
   0xf   : > { %8252 = vmatprep.subr.bf16.mxu1 (!%p259_p9), %v9066_v3  ;;  %7389 = vmatprep.mubr.msk.f32.mxu1 (!%p259_p9), %vm9067_vm0, %v9068_v6  ;;  %v8250_v7 = vpack.c.bf16 (!%p259_p9), %v358_v5, %v357_v2  ;;  %v8259_v11 = vpack.c.bf16 (!%p259_p9), %v6852_v9, %v6851_v8  ;;  %v6853_v12 = vld [vmem:[%s10162_s3 + $0x50] sm:$0xff] (!%p259_p9)  ;;  %v6854_v13 = vld [vmem:[%s10162_s3 + $0x58] sm:$0xff] (!%p259_p9)  ;;  %vm759_vm2 = vcmask (!%p259_p9), 64512   ;;  %v6844_v28 = vld [vmem:[%s10162_s3 + $0x20] sm:$0xff] (!%p259_p9)  ;;  %s6970_s22 = sshll.u32 (!%p259_p9), %s9131_s28, 7 }
  0x10   : > { %8248 = vmatpush3.bf16.msra.mxu0 (!%p259_p9), %v8247_v4  ;;  %v8262_v14 = vpack.c.bf16 (!%p259_p9), %v6854_v13, %v6853_v12  ;;  %v6845_v29 = vld [vmem:[%s10162_s3 + $0x28] sm:$0xff] (!%p259_p9)  ;;  %v6846_v30 = vld [vmem:[%s10162_s3 + $0x30] sm:$0xff] (!%p259_p9)  ;;  %v6847_v32 = vld [vmem:[%s10162_s3 + $0x38] sm:$0xff] (!%p259_p9) }
  0x11   : > { %8249 = vmatprep.subr.bf16.mxu0 (!%p259_p9), %v9066_v3  ;;  %v8253_v31 = vpack.c.bf16 (!%p259_p9), %v6845_v29, %v6844_v28  ;;  %v8256_v33 = vpack.c.bf16 (!%p259_p9), %v6847_v32, %v6846_v30  ;;  %v6858_v39 = vld [vmem:[%s10162_s3 + $0x60] sm:$0xff] (!%p259_p9)  ;;  %v6859_v40 = vld [vmem:[%s10162_s3 + $0x68] sm:$0xff] (!%p259_p9)  ;;  %v6860_v42 = vld [vmem:[%s10162_s3 + $0x70] sm:$0xff] (!%p259_p9) }
  0x12   : > { %v8265_v41 = vpack.c.bf16 (!%p259_p9), %v6859_v40, %v6858_v39  ;;  %v6861_v43 = vld [vmem:[%s10162_s3 + $0x78] sm:$0xff] (!%p259_p9)  ;;  %v6818_v46 = vld [vmem:[%s10163_s4 + $0x20] sm:$0xff] (!%p259_p9)  ;;  %v6819_v47 = vld [vmem:[%s10163_s4 + $0x28] sm:$0xff] (!%p259_p9) }
  0x13   : > { %8254 = vmatpush3.bf16.msra.mxu1 (!%p259_p9), %v8253_v31  ;;  %v8268_v44 = vpack.c.bf16 (!%p259_p9), %v6861_v43, %v6860_v42  ;;  %v9291_v48 = vpack.c.bf16 (!%p259_p9), %v6819_v47, %v6818_v46  ;;  %v6820_v51 = vld [vmem:[%s10163_s4 + $0x30] sm:$0xff] (!%p259_p9)  ;;  %v6821_v52 = vld [vmem:[%s10163_s4 + $0x38] sm:$0xff] (!%p259_p9)  ;;  %v317_v55 = vld [vmem:[%s10163_s4] sm:$0xff] (!%p259_p9) }
  0x14   : > { %8251 = vmatpush3.bf16.msra.mxu0 (!%p259_p9), %v8250_v7  ;;  %8255 = vmatprep.subr.bf16.mxu1 (!%p259_p9), %v9066_v3  ;;  %v9303_v53 = vpack.c.bf16 (!%p259_p9), %v6821_v52, %v6820_v51  ;;  %v318_v56 = vld [vmem:[%s10163_s4 + $0x8] sm:$0xff] (!%p259_p9)  ;;  %v319_v60 = vld [vmem:[%s10163_s4 + $0x10] sm:$0xff] (!%p259_p9)  ;;  %v320_v61 = vld [vmem:[%s10163_s4 + $0x18] sm:$0xff] (!%p259_p9) }
  0x15   : > { %s9178_s21 = scalar_select %p298_p10, %s9131_s28, 1  ;;  %8258 = vmatprep.subr.bf16.mxu0 %v9066_v3  ;;  %v9313_v58 = vpack.c.bf16 %v318_v56, %v317_v55  ;;  %v9323_v62 = vpack.c.bf16 %v320_v61, %v319_v60  ;;  %v336_v1 = vld [vmem:[%s10164_s5] sm:$0xff]  ;;  %v337_v2 = vld [vmem:[%s10164_s5 + $0x8] sm:$0xff]  ;;  %v338_v9 = vld [vmem:[%s10164_s5 + $0x10] sm:$0xff] }
  0x16   : > { %v6830_v4 = vld [vmem:[%s10164_s5 + $0x20] sm:$0xff]  ;;  %v6831_v5 = vld [vmem:[%s10164_s5 + $0x28] sm:$0xff]  ;;  %v9344_v7 = vpack.c.bf16 %v337_v2, %v336_v1  ;;  %v6832_v12 = vld [vmem:[%s10164_s5 + $0x30] sm:$0xff]  ;;  %s9069_s28 = smov [#allocation2]  }
  0x17   : > { %s6814_s9 = sshll.u32 %s9178_s21, 3  ;;  %s6973_s16 = sshll.u32 %s9178_s21, 5  ;;  %8257 = vmatpush3.bf16.msra.mxu1 %v8256_v33  ;;  %v9346_v8 = vpack.c.bf16 %v6831_v5, %v6830_v4  ;;  %v6833_v13 = vld [vmem:[%s10164_s5 + $0x38] sm:$0xff]  ;;  %v6824_v28 = vld [vmem:[%s10163_s4 + $0x50] sm:$0xff]  ;;  %v6842_v47 = vld [vmem:[%s10165_s6] ss:$0 sm:$0xff] }
  0x18   : > { %s9193_s15 = scalar_lea.vmem %s10159_s0, %s6814_s9  ;;  %s310_s29 = scalar_lea.vmem %s10161_s2, %s6973_s16  ;;  %8264 = vmatprep.subr.bf16.mxu1 %v9066_v3  ;;  %v6825_v29 = vld [vmem:[%s10163_s4 + $0x58] sm:$0xff]  ;;  %v6828_v30 = vld [vmem:[%s10163_s4 + $0x70] sm:$0xff] }
  0x19   : > { %v9197_v10 = vld [vmem:[%s9193_s15] sm:$0xff]  ;;  %v314_v16 = vld [vmem:[%s310_s29 + $0x8] sm:$0xff]  ;;  %v315_v18 = vld [vmem:[%s310_s29 + $0x10] sm:$0xff]  ;;  %s9278_s20 = scalar_lea.vmem %s10160_s1, %s6814_s9  ;;  %v9412_v32 = vpack.c.bf16 %v6825_v29, %v6824_v28  ;;  %s10116_s9 = scalar_lea.hbm %s10166_s7, %s6970_s22 }
  0x1a   : > { %7379 = vmatmul.mubr.msk.f32.vlgmr.msra.gmra.mrb[0].mxu0 %vm366_vm1, %v9197_v10  ;;  %v313_v15 = vld [vmem:[%s310_s29] sm:$0xff]  ;;  %v316_v19 = vld [vmem:[%s310_s29 + $0x18] sm:$0xff]  ;;  %7390 = vmatmul.mubr.msk.f32.vlgmr.msra.gmra.mrb[0].mxu1 %vm366_vm1, %v9197_v10  ;;  %v6836_v40 = vld [vmem:[%s10164_s5 + $0x50] sm:$0xff]  ;;  %s9006_s16 = sshll.u32 %s9069_s28, 4  ;;  %s9007_s16 = int_to_ptr.vmem [resolvable:$false] %s9006_s16 }
  0x1b   : > { %8260 = vmatpush3.bf16.msra.mxu0 %v8259_v11  ;;  %7400 = vmatprep.mubr.msk.f32.mxu0 %vm9067_vm0, %v9068_v6  ;;  %v9214_v17 = vpack.c.bf16 %v314_v16, %v313_v15  ;;  %v9220_v20 = vpack.c.bf16 %v316_v19, %v315_v18  ;;  %v9281_v45 = vld [vmem:[%s9278_s20] sm:$0xff]  ;;  %v339_v11 = vld [vmem:[%s10164_s5 + $0x18] sm:$0xff]  ;;  %v9366_v18 = vpack.c.bf16 %v6833_v13, %v6832_v12  ;;  %v6840_v42 = vld [vmem:[%s10164_s5 + $0x70] sm:$0xff]  ;;  %s9008_s17 = scalar_lea.vmem %s9007_s16, 256 }
  0x1c   : > { %8261 = vmatprep.subr.bf16.mxu0 %v9066_v3  ;;  %7411 = vmatprep.mubr.msk.f32.mxu1 %vm9067_vm0, %v9068_v6  ;;  %v9364_v16 = vpack.c.bf16 %v339_v11, %v338_v9  ;;  %v6822_v19 = vld [vmem:[%s10163_s4 + $0x40] sm:$0xff]  ;;  %v6829_v31 = vld [vmem:[%s10163_s4 + $0x78] sm:$0xff] }
  0x1d   : > { %8266 = vmatpush3.bf16.msra.mxu1 %v8265_v41  ;;  %v9414_v33 = vpack.c.bf16 %v6829_v31, %v6828_v30  ;;  %v6837_v41 = vld [vmem:[%s10164_s5 + $0x58] sm:$0xff] }
  0x1e   : > { %8267 = vmatprep.subr.bf16.mxu1 %v9066_v3  ;;  %v6841_v43 = vld [vmem:[%s10164_s5 + $0x78] sm:$0xff] }
  0x1f   : > { %8263 = vmatpush3.bf16.msra.mxu0 %v8262_v14  ;;  %v9460_v46 = vpack.c.bf16 %v6841_v43, %v6840_v42 }
  0x20   : > { %8270 = vmatprep.subr.bf16.mxu0 %v9066_v3 }
  0x21   : > { %8269 = vmatpush3.bf16.msra.mxu1 %v8268_v44  ;;  %v9458_v44 = vpack.c.bf16 %v6837_v41, %v6836_v40 }
  0x22   : > { %7401 = vmatmul.mubr.msk.f32.vlgmr.msra.gmra.mrb[2].mxu0 %vm366_vm1, %v9197_v10  ;;  %7425 = vmatprep.subr.mxu1 %v9068_v6 }
  0x23   : > { %8272 = vmatpush3.bf16.msra.mxu0 %v9214_v17  ;;  %7422 = vmatprep.mubr.msk.f32.mxu0 %vm9067_vm0, %v9068_v6 }
  0x24   : > { %8273 = vmatprep.subr.bf16.mxu0 %v9066_v3  ;;  %7412 = vmatmul.mubr.msk.f32.vlgmr.msra.gmra.mrb[2].mxu1 %vm366_vm1, %v9197_v10 }
  0x25   : > { %7427 = vmatprep.mubr.msk.f32.mxu1 %vm9067_vm0, %v9068_v6  ;;  %7426 = vmatpush3.msra.mxu1 %v9281_v45 }
  0x26   : > { %8276 = vmatprep.subr.bf16.mxu1 %v9066_v3 }
  0x27   : > { %8275 = vmatpush3.bf16.msra.mxu0 %v9220_v20 }
  0x28   : > { %8288 = vmatprep.subr.bf16.mxu0 %v9066_v3 }
  0x2a   : > { %7423 = vmatmul.mubr.msk.f32.vlgmr.msra.gmra.mrb[4].mxu0 %vm366_vm1, %v9197_v10 }
  0x2b   : > { %7460 = vmatprep.mubr.msk.f32.mxu0 %vm9067_vm0, %v9068_v6  ;;  %8290 = vmatpush3.bf16.msra.mxu0 %v9291_v48 }
  0x2c   : > { %8291 = vmatprep.subr.bf16.mxu0 %v9066_v3 }
  0x2f   : > { %8293 = vmatpush3.bf16.msra.mxu0 %v9303_v53 }
  0x30   : > { %8294 = vmatprep.subr.bf16.mxu0 %v9066_v3 }
  0xed   : > { %v9231_v21 = vpop.f32.mrb[0].mxu0  ;;  %v9295_v49 = vpop.f32.mrb[0].mxu1 }
  0xee   : > { %v7380_v22 = vpop.f32.mrb[1].mxu0  ;;  %v7391_v50 = vpop.f32.mrb[1].mxu1  ;;  %v9493_v51 = vadd.f32 %v6842_v47, %v9231_v21  ;;  %v6856_v21 = vld [vmem:[%s10165_s6 + $0x2] ss:$0 sm:$0xff] }
  0xef   : > { %v6823_v22 = vld [vmem:[%s10163_s4 + $0x48] sm:$0xff]  ;;  %v6849_v50 = vld [vmem:[%s10165_s6 + $0x1] ss:$0 sm:$0xff] }
  0xf0   : > { %v9496_v52 = vadd.f32 %v6849_v50, %v9295_v49  ;;  %v6863_v49 = vld [vmem:[%s10165_s6 + $0x3] ss:$0 sm:$0xff] }
  0xf5   : > { %v9233_v23 = vpop.f32.mrb[2].mxu0 }
  0xf6   : > { %v7402_v24 = vpop.f32.mrb[3].mxu0  ;;  %v9507_v2 = vadd.f32 %v6856_v21, %v9233_v23 }
  0xf7   : > { %v9330_v63 = vpop.f32.mrb[2].mxu1  ;;  %v6826_v24 = vld [vmem:[%s10163_s4 + $0x60] sm:$0xff] }
  0xf8   : > { %v7413_v0 = vpop.f32.mrb[3].mxu1  ;;  %v9510_v4 = vadd.f32 %v6863_v49, %v9330_v63 }
  0xfd   : > { %v755_v25 = vpop.f32.mrb[4].mxu0 }
  0xfe   : > { %v7424_v26 = vpop.f32.mrb[5].mxu0  ;;  %v760_v27 = vsel %vm759_vm2, %v755_v25, -inf }
  0xff   : > { %761 = vmax.xlane.f32.xlu0 %v760_v27  ;;  %v9388_v26 = vpack.c.bf16 %v6823_v22, %v6822_v19 }
 0x18c   : > { %v762_v34 = vpop.xlane.xlu0 %761 }
 0x18d   : > { %v763_v35 = vsub.f32 %v755_v25, %v762_v34  ;;  %v6827_v25 = vld [vmem:[%s10163_s4 + $0x68] sm:$0xff]  ;;  %v6834_v34 = vld [vmem:[%s10164_s5 + $0x40] sm:$0xff] }
 0x18e   : > { %v9390_v27 = vpack.c.bf16 %v6827_v25, %v6826_v24 }
 0x18f   : > { %v764_v36 = vmul.f32 1.442695, %v763_v35  ;;  %v6835_v35 = vld [vmem:[%s10164_s5 + $0x48] sm:$0xff] }
 0x191   : > { %8840 = vpow2.f32 %v764_v36  ;;  %v6838_v36 = vld [vmem:[%s10164_s5 + $0x60] sm:$0xff] }
 0x19b   : > { %v8841_v37 = vpop.eup %8840 }
 0x19c   : > { %v766_v38 = vsel %vm759_vm2, %v8841_v37, 0.0 }
 0x19d   : > { %767 = vadd.xlane.f32.xlu0 %v766_v38  ;;  %v9436_v38 = vpack.c.bf16 %v6835_v35, %v6834_v34 }
 0x22a   : > { %v768_v54 = vpop.xlane.xlu0 %767 }
 0x22b   : > { %8842 = vrcp.f32 %v768_v54 }
 0x235   : > { %v8843_v57 = vpop.eup %8842 }
 0x236   : > { %v770_v59 = vmul.f32 %v8843_v57, %v8841_v37  ;;  %v6839_v37 = vld [vmem:[%s10164_s5 + $0x68] sm:$0xff] }
 0x237   : > { %v9438_v39 = vpack.c.bf16 %v6839_v37, %v6838_v36 }
 0x238   : > { %7428 = vmatmul.mubr.msk.f32.vlgmr.msra.gmra.mrb[4].mxu1 %vm759_vm2, %v770_v59 }
 0x239   : > { %8278 = vmatpush3.bf16.msra.mxu1 %v9313_v58  ;;  %7438 = vmatprep.mubr.msk.f32.mxu1 %vm9067_vm0, %v9068_v6 }
 0x23a   : > { %8279 = vmatprep.subr.bf16.mxu1 %v9066_v3 }
 0x23d   : > { %8281 = vmatpush3.bf16.msra.mxu1 %v9323_v62 }
 0x23e   : > { %8282 = vmatprep.subr.bf16.mxu1 %v9066_v3 }
 0x30b   : > { %v840_v14 = vpop.f32.mrb[4].mxu1 }
 0x30c   : > { %v7429_v15 = vpop.f32.mrb[5].mxu1  ;;  %7439 = vmatmul.mubr.msk.f32.vlgmr.msra.gmra.mrb[6].mxu1 %vm366_vm1, %v840_v14  ;;  %7461 = vmatmul.mubr.msk.f32.vlgmr.msra.gmra.mrb[6].mxu0 %vm366_vm1, %v840_v14 }
 0x30d   : > { %8284 = vmatpush3.bf16.msra.mxu1 %v9344_v7  ;;  %8296 = vmatpush3.bf16.msra.mxu0 %v9346_v8 }
 0x30e   : > { %8285 = vmatprep.subr.bf16.mxu1 %v9066_v3  ;;  %8297 = vmatprep.subr.bf16.mxu0 %v9066_v3 }
 0x30f   : > { %7449 = vmatprep.mubr.msk.f32.mxu1 %vm9067_vm0, %v9068_v6  ;;  %7471 = vmatprep.mubr.msk.f32.mxu0 %vm9067_vm0, %v9068_v6 }
 0x311   : > { %8287 = vmatpush3.bf16.msra.mxu1 %v9364_v16  ;;  %8299 = vmatpush3.bf16.msra.mxu0 %v9366_v18 }
 0x312   : > { %8300 = vmatprep.subr.bf16.mxu1 %v9066_v3  ;;  %8312 = vmatprep.subr.bf16.mxu0 %v9066_v3 }
 0x314   : > { %7450 = vmatmul.mubr.msk.f32.vlgmr.msra.gmra.mrb[6].mxu1 %vm366_vm1, %v9197_v10  ;;  %7472 = vmatmul.mubr.msk.f32.vlgmr.msra.gmra.mrb[6].mxu0 %vm366_vm1, %v9197_v10 }
 0x315   : > { %8302 = vmatpush3.bf16.msra.mxu1 %v9388_v26  ;;  %8314 = vmatpush3.bf16.msra.mxu0 %v9390_v27 }
 0x316   : > { %8303 = vmatprep.subr.bf16.mxu1 %v9066_v3  ;;  %8315 = vmatprep.subr.bf16.mxu0 %v9066_v3 }
 0x317   : > { %7482 = vmatprep.mubr.msk.f32.mxu1 %vm9067_vm0, %v9068_v6  ;;  %7504 = vmatprep.mubr.msk.f32.mxu0 %vm9067_vm0, %v9068_v6 }
 0x319   : > { %8305 = vmatpush3.bf16.msra.mxu1 %v9412_v32  ;;  %8317 = vmatpush3.bf16.msra.mxu0 %v9414_v33 }
 0x31a   : > { %8306 = vmatprep.subr.bf16.mxu1 %v9066_v3  ;;  %8318 = vmatprep.subr.bf16.mxu0 %v9066_v3 }
 0x31c   : > { %7483 = vmatmul.mubr.msk.f32.vlgmr.msra.gmra.mrb[8].mxu1 %vm366_vm1, %v840_v14  ;;  %7505 = vmatmul.mubr.msk.f32.vlgmr.msra.gmra.mrb[8].mxu0 %vm366_vm1, %v840_v14 }
 0x31d   : > { %8308 = vmatpush3.bf16.msra.mxu1 %v9436_v38  ;;  %8320 = vmatpush3.bf16.msra.mxu0 %v9438_v39 }
 0x31e   : > { %8309 = vmatprep.subr.bf16.mxu1 %v9066_v3  ;;  %8321 = vmatprep.subr.bf16.mxu0 %v9066_v3 }
 0x31f   : > { %7493 = vmatprep.mubr.msk.f32.mxu1 %vm9067_vm0, %v9068_v6  ;;  %7515 = vmatprep.mubr.msk.f32.mxu0 %vm9067_vm0, %v9068_v6 }
 0x321   : > { %8311 = vmatpush3.bf16.msra.mxu1 %v9458_v44  ;;  %8323 = vmatpush3.bf16.msra.mxu0 %v9460_v46 }
 0x322   : > { %8324 = vmatprep.subr.bf16.mxu1 %v9066_v3  ;;  %7529 = vmatprep.subr.mxu0 %v9068_v6 }
 0x324   : > { %7494 = vmatmul.mubr.msk.f32.vlgmr.msra.gmra.mrb[8].mxu1 %vm366_vm1, %v9197_v10  ;;  %7516 = vmatmul.mubr.msk.f32.vlgmr.msra.gmra.mrb[8].mxu0 %vm366_vm1, %v9197_v10 }
 0x325   : > { %8326 = vmatpush3.bf16.msra.mxu1 %v9214_v17  ;;  %7526 = vmatprep.mubr.msk.f32.mxu1 %vm9067_vm0, %v9068_v6 }
 0x326   : > { %8327 = vmatprep.subr.bf16.mxu1 %v9066_v3  ;;  %7530 = vmatpush3.msra.mxu0 %v9281_v45 }
 0x327   : > { %7531 = vmatprep.mubr.msk.f32.mxu0 %vm9067_vm0, %v9068_v6  ;;  %8330 = vmatprep.subr.bf16.mxu0 %v9066_v3 }
 0x329   : > { %8329 = vmatpush3.bf16.msra.mxu1 %v9220_v20 }
 0x32a   : > { %8342 = vmatprep.subr.bf16.mxu1 %v9066_v3 }
 0x3e7   : > { %v984_v54 = vpop.f32.mrb[6].mxu1  ;;  %v1126_v55 = vpop.f32.mrb[6].mxu0 }
 0x3e8   : > { %v8702_v56 = vadd.f32 %v984_v54, %v9493_v51  ;;  %v8703_v57 = vadd.f32 %v1126_v55, %v9496_v52  ;;  %v7451_v59 = vpop.f32.mrb[7].mxu1  ;;  %v7473_v60 = vpop.f32.mrb[7].mxu0 }
 0x3ea   : > { %v6875_v61 = vmul.f32 -1.442695, %v8702_v56  ;;  %v6876_v0 = vmul.f32 -1.442695, %v8703_v57 }
 0x3ec   : > { %8844 = vpow2.f32 %v6875_v61 }
 0x3ed   : > { %8846 = vpow2.f32 %v6876_v0 }
 0x3f6   : > { %v8845_v1 = vpop.eup %8844 }
 0x3f7   : > { %v8847_v5 = vpop.eup %8846  ;;  %v1418_v9 = vadd.f32 1.0, %v8845_v1  ;;  %v1268_v11 = vpop.f32.mrb[8].mxu1 }
 0x3f8   : > { %v1410_v12 = vpop.f32.mrb[8].mxu0  ;;  %v1424_v13 = vadd.f32 1.0, %v8847_v5  ;;  %v8704_v14 = vadd.f32 %v1268_v11, %v9507_v2  ;;  %v7495_v19 = vpop.f32.mrb[9].mxu1 }
 0x3f9   : > { %v8705_v15 = vadd.f32 %v1410_v12, %v9510_v4  ;;  %v7517_v22 = vpop.f32.mrb[9].mxu0  ;;  %8848 = vrcp.f32 %v1418_v9 }
 0x3fa   : > { %8850 = vrcp.f32 %v1424_v13 }
 0x3fb   : > { %v6877_v24 = vmul.f32 -1.442695, %v8705_v15  ;;  %8852 = vtanh.f32 %v8704_v14 }
 0x3fd   : > { %8854 = vpow2.f32 %v6877_v24 }
 0x403   : > { %v8849_v23 = vpop.eup %8848 }
 0x404   : > { %v8851_v25 = vpop.eup %8850 }
 0x405   : > { %v8853_v63 = vpop.eup %8852  ;;  %v1434_v28 = vmul.f32 0.0, %v8851_v25 }
 0x406   : > { %v1435_v30 = vmul.f32 %v8853_v63, %v8849_v23 }
 0x407   : > { %v8855_v29 = vpop.eup %8854 }
 0x408   : > { %v1431_v31 = vadd.f32 1.0, %v8855_v29  ;;  %v9514_v34 = vadd.f32 %v1435_v30, %v1434_v28 }
 0x40a   : > { %8856 = vrcp.f32 %v1431_v31 }
 0x40b   : > { %8858 = vtanh.f32 %v9514_v34 }
 0x414   : > { %v8857_v35 = vpop.eup %8856 }
 0x415   : > { %v8859_v36 = vpop.eup %8858 }
 0x416   : > { %v1438_v37 = vmul.f32 %v8859_v36, %v8857_v35 }
 0x418   : > { %v9518_v40 = vadd.f32 %v1438_v37, %v9197_v10 }
 0x41a   : > { %7527 = vmatmul.mubr.msk.f32.vlgmr.msra.gmra.mrb[10].mxu1 %vm366_vm1, %v9518_v40 }
 0x41b   : > { %8344 = vmatpush3.bf16.msra.mxu1 %v9291_v48  ;;  %7564 = vmatprep.mubr.msk.f32.mxu1 %vm9067_vm0, %v9068_v6 }
 0x41c   : > { %8345 = vmatprep.subr.bf16.mxu1 %v9066_v3 }
 0x41f   : > { %8347 = vmatpush3.bf16.msra.mxu1 %v9303_v53 }
 0x420   : > { %8348 = vmatprep.subr.bf16.mxu1 %v9066_v3 }
 0x4ed   : > { %v1509_v41 = vpop.f32.mrb[10].mxu1 }
 0x4ee   : > { %v7528_v42 = vpop.f32.mrb[11].mxu1  ;;  %v1513_v43 = vsel %vm759_vm2, %v1509_v41, -inf }
 0x4ef   : > { %1514 = vmax.xlane.f32.xlu1 %v1513_v43 }
 0x57c   : > { %v1515_v47 = vpop.xlane.xlu1 %1514 }
 0x57d   : > { %v1516_v50 = vsub.f32 %v1509_v41, %v1515_v47 }
 0x57f   : > { %v1517_v54 = vmul.f32 1.442695, %v1516_v50 }
 0x581   : > { %8860 = vpow2.f32 %v1517_v54 }
 0x58b   : > { %v8861_v55 = vpop.eup %8860 }
 0x58c   : > { %v1519_v56 = vsel %vm759_vm2, %v8861_v55, 0.0 }
 0x58d   : > { %1520 = vadd.xlane.f32.xlu1 %v1519_v56 }
 0x61a   : > { %v1521_v57 = vpop.xlane.xlu1 %1520 }
 0x61b   : > { %8862 = vrcp.f32 %v1521_v57 }
 0x625   : > { %v8863_v59 = vpop.eup %8862 }
 0x626   : > { %v1523_v60 = vmul.f32 %v8863_v59, %v8861_v55 }
 0x628   : > { %7532 = vmatmul.mubr.msk.f32.vlgmr.msra.gmra.mrb[10].mxu0 %vm759_vm2, %v1523_v60 }
 0x629   : > { %8332 = vmatpush3.bf16.msra.mxu0 %v9313_v58  ;;  %7542 = vmatprep.mubr.msk.f32.mxu0 %vm9067_vm0, %v9068_v6 }
 0x62a   : > { %8333 = vmatprep.subr.bf16.mxu0 %v9066_v3 }
 0x62d   : > { %8335 = vmatpush3.bf16.msra.mxu0 %v9323_v62 }
 0x62e   : > { %8336 = vmatprep.subr.bf16.mxu0 %v9066_v3 }
 0x6fb   : > { %v1593_v61 = vpop.f32.mrb[10].mxu0 }
 0x6fc   : > { %v7533_v0 = vpop.f32.mrb[11].mxu0  ;;  %7543 = vmatmul.mubr.msk.f32.vlgmr.msra.gmra.mrb[12].mxu0 %vm366_vm1, %v1593_v61  ;;  %7565 = vmatmul.mubr.msk.f32.vlgmr.msra.gmra.mrb[12].mxu1 %vm366_vm1, %v1593_v61 }
 0x6fd   : > { %8338 = vmatpush3.bf16.msra.mxu0 %v9344_v7  ;;  %8350 = vmatpush3.bf16.msra.mxu1 %v9346_v8 }
 0x6fe   : > { %8339 = vmatprep.subr.bf16.mxu0 %v9066_v3  ;;  %8351 = vmatprep.subr.bf16.mxu1 %v9066_v3 }
 0x6ff   : > { %7553 = vmatprep.mubr.msk.f32.mxu0 %vm9067_vm0, %v9068_v6  ;;  %7575 = vmatprep.mubr.msk.f32.mxu1 %vm9067_vm0, %v9068_v6 }
 0x701   : > { %8341 = vmatpush3.bf16.msra.mxu0 %v9364_v16  ;;  %8353 = vmatpush3.bf16.msra.mxu1 %v9366_v18 }
 0x702   : > { %8354 = vmatprep.subr.bf16.mxu0 %v9066_v3  ;;  %8366 = vmatprep.subr.bf16.mxu1 %v9066_v3 }
 0x704   : > { %7554 = vmatmul.mubr.msk.f32.vlgmr.msra.gmra.mrb[12].mxu0 %vm366_vm1, %v9518_v40  ;;  %7576 = vmatmul.mubr.msk.f32.vlgmr.msra.gmra.mrb[12].mxu1 %vm366_vm1, %v9518_v40 }
 0x705   : > { %8356 = vmatpush3.bf16.msra.mxu0 %v9388_v26  ;;  %8368 = vmatpush3.bf16.msra.mxu1 %v9390_v27 }
 0x706   : > { %8357 = vmatprep.subr.bf16.mxu0 %v9066_v3  ;;  %8369 = vmatprep.subr.bf16.mxu1 %v9066_v3 }
 0x707   : > { %7586 = vmatprep.mubr.msk.f32.mxu0 %vm9067_vm0, %v9068_v6  ;;  %7608 = vmatprep.mubr.msk.f32.mxu1 %vm9067_vm0, %v9068_v6 }
 0x709   : > { %8359 = vmatpush3.bf16.msra.mxu0 %v9412_v32  ;;  %8371 = vmatpush3.bf16.msra.mxu1 %v9414_v33 }
 0x70a   : > { %8360 = vmatprep.subr.bf16.mxu0 %v9066_v3  ;;  %8372 = vmatprep.subr.bf16.mxu1 %v9066_v3 }
 0x70c   : > { %7587 = vmatmul.mubr.msk.f32.vlgmr.msra.gmra.mrb[14].mxu0 %vm366_vm1, %v1593_v61  ;;  %7609 = vmatmul.mubr.msk.f32.vlgmr.msra.gmra.mrb[14].mxu1 %vm366_vm1, %v1593_v61 }
 0x70d   : > { %8362 = vmatpush3.bf16.msra.mxu0 %v9436_v38  ;;  %8374 = vmatpush3.bf16.msra.mxu1 %v9438_v39 }
 0x70e   : > { %8363 = vmatprep.subr.bf16.mxu0 %v9066_v3  ;;  %8375 = vmatprep.subr.bf16.mxu1 %v9066_v3 }
 0x70f   : > { %7597 = vmatprep.mubr.msk.f32.mxu0 %vm9067_vm0, %v9068_v6  ;;  %7619 = vmatprep.mubr.msk.f32.mxu1 %vm9067_vm0, %v9068_v6 }
 0x711   : > { %8365 = vmatpush3.bf16.msra.mxu0 %v9458_v44  ;;  %8377 = vmatpush3.bf16.msra.mxu1 %v9460_v46 }
 0x712   : > { %8378 = vmatprep.subr.bf16.mxu0 %v9066_v3  ;;  %7633 = vmatprep.subr.mxu1 %v9068_v6 }
 0x714   : > { %7598 = vmatmul.mubr.msk.f32.vlgmr.msra.gmra.mrb[14].mxu0 %vm366_vm1, %v9518_v40  ;;  %7620 = vmatmul.mubr.msk.f32.vlgmr.msra.gmra.mrb[14].mxu1 %vm366_vm1, %v9518_v40 }
 0x715   : > { %8380 = vmatpush3.bf16.msra.mxu0 %v9214_v17  ;;  %7630 = vmatprep.mubr.msk.f32.mxu0 %vm9067_vm0, %v9068_v6 }
 0x716   : > { %8381 = vmatprep.subr.bf16.mxu0 %v9066_v3  ;;  %7634 = vmatpush3.msra.mxu1 %v9281_v45 }
 0x717   : > { %7635 = vmatprep.mubr.msk.f32.mxu1 %vm9067_vm0, %v9068_v6  ;;  %8384 = vmatprep.subr.bf16.mxu1 %v9066_v3 }
 0x719   : > { %8383 = vmatpush3.bf16.msra.mxu0 %v9220_v20 }
 0x71a   : > { %8396 = vmatprep.subr.bf16.mxu0 %v9066_v3 }
 0x7d7   : > { %v1737_v21 = vpop.f32.mrb[12].mxu0  ;;  %v1879_v49 = vpop.f32.mrb[12].mxu1 }
 0x7d8   : > { %v8706_v1 = vadd.f32 %v1737_v21, %v9493_v51  ;;  %v8707_v5 = vadd.f32 %v1879_v49, %v9496_v52  ;;  %v7555_v9 = vpop.f32.mrb[13].mxu0  ;;  %v7577_v11 = vpop.f32.mrb[13].mxu1 }
 0x7da   : > { %v6888_v12 = vmul.f32 -1.442695, %v8706_v1  ;;  %v6889_v13 = vmul.f32 -1.442695, %v8707_v5 }
 0x7dc   : > { %8864 = vpow2.f32 %v6888_v12 }
 0x7dd   : > { %8866 = vpow2.f32 %v6889_v13 }
 0x7e6   : > { %v8865_v14 = vpop.eup %8864 }
 0x7e7   : > { %v8867_v15 = vpop.eup %8866  ;;  %v2171_v19 = vadd.f32 1.0, %v8865_v14  ;;  %v2021_v22 = vpop.f32.mrb[14].mxu0 }
 0x7e8   : > { %v2163_v24 = vpop.f32.mrb[14].mxu1  ;;  %v2177_v23 = vadd.f32 1.0, %v8867_v15  ;;  %v8708_v25 = vadd.f32 %v2021_v22, %v9507_v2  ;;  %v7599_v28 = vpop.f32.mrb[15].mxu0 }
 0x7e9   : > { %v8709_v63 = vadd.f32 %v2163_v24, %v9510_v4  ;;  %v7621_v29 = vpop.f32.mrb[15].mxu1  ;;  %8868 = vrcp.f32 %v2171_v19 }
 0x7ea   : > { %8870 = vrcp.f32 %v2177_v23 }
 0x7eb   : > { %v6890_v30 = vmul.f32 -1.442695, %v8709_v63  ;;  %8872 = vtanh.f32 %v8708_v25 }
 0x7ed   : > { %8874 = vpow2.f32 %v6890_v30 }
 0x7f3   : > { %v8869_v31 = vpop.eup %8868 }
 0x7f4   : > { %v8871_v35 = vpop.eup %8870 }
 0x7f5   : > { %v8873_v36 = vpop.eup %8872  ;;  %v2187_v37 = vmul.f32 %v8871_v35, %v9514_v34 }
 0x7f6   : > { %v2188_v41 = vmul.f32 %v8873_v36, %v8869_v31 }
 0x7f7   : > { %v8875_v40 = vpop.eup %8874 }
 0x7f8   : > { %v2184_v42 = vadd.f32 1.0, %v8875_v40  ;;  %v9600_v43 = vadd.f32 %v2188_v41, %v2187_v37 }
 0x7fa   : > { %8876 = vrcp.f32 %v2184_v42 }
 0x7fb   : > { %8878 = vtanh.f32 %v9600_v43 }
 0x804   : > { %v8877_v47 = vpop.eup %8876 }
 0x805   : > { %v8879_v50 = vpop.eup %8878 }
 0x806   : > { %v2191_v54 = vmul.f32 %v8879_v50, %v8877_v47 }
 0x808   : > { %v9604_v55 = vadd.f32 %v2191_v54, %v9197_v10 }
 0x80a   : > { %7631 = vmatmul.mubr.msk.f32.vlgmr.msra.gmra.mrb[16].mxu0 %vm366_vm1, %v9604_v55 }
 0x80b   : > { %8398 = vmatpush3.bf16.msra.mxu0 %v9291_v48  ;;  %7668 = vmatprep.mubr.msk.f32.mxu0 %vm9067_vm0, %v9068_v6 }
 0x80c   : > { %8399 = vmatprep.subr.bf16.mxu0 %v9066_v3 }
 0x80f   : > { %8401 = vmatpush3.bf16.msra.mxu0 %v9303_v53 }
 0x810   : > { %8402 = vmatprep.subr.bf16.mxu0 %v9066_v3 }
 0x8dd   : > { %v2262_v34 = vpop.f32.mrb[16].mxu0 }
 0x8de   : > { %v7632_v56 = vpop.f32.mrb[17].mxu0  ;;  %v2266_v57 = vsel %vm759_vm2, %v2262_v34, -inf }
 0x8df   : > { %2267 = vmax.xlane.f32.xlu0 %v2266_v57 }
 0x96c   : > { %v2268_v59 = vpop.xlane.xlu0 %2267 }
 0x96d   : > { %v2269_v60 = vsub.f32 %v2262_v34, %v2268_v59 }
 0x96f   : > { %v2270_v61 = vmul.f32 1.442695, %v2269_v60 }
 0x971   : > { %8880 = vpow2.f32 %v2270_v61 }
 0x97b   : > { %v8881_v0 = vpop.eup %8880 }
 0x97c   : > { %v2272_v21 = vsel %vm759_vm2, %v8881_v0, 0.0 }
 0x97d   : > { %2273 = vadd.xlane.f32.xlu1 %v2272_v21 }
 0xa0a   : > { %v2274_v49 = vpop.xlane.xlu1 %2273 }
 0xa0b   : > { %8882 = vrcp.f32 %v2274_v49 }
 0xa15   : > { %v8883_v1 = vpop.eup %8882 }
 0xa16   : > { %v2276_v5 = vmul.f32 %v8883_v1, %v8881_v0 }
 0xa18   : > { %7636 = vmatmul.mubr.msk.f32.vlgmr.msra.gmra.mrb[16].mxu1 %vm759_vm2, %v2276_v5 }
 0xa19   : > { %8386 = vmatpush3.bf16.msra.mxu1 %v9313_v58  ;;  %7646 = vmatprep.mubr.msk.f32.mxu1 %vm9067_vm0, %v9068_v6 }
 0xa1a   : > { %8387 = vmatprep.subr.bf16.mxu1 %v9066_v3 }
 0xa1d   : > { %8389 = vmatpush3.bf16.msra.mxu1 %v9323_v62 }
 0xa1e   : > { %8390 = vmatprep.subr.bf16.mxu1 %v9066_v3 }
 0xaeb   : > { %v2346_v9 = vpop.f32.mrb[16].mxu1 }
 0xaec   : > { %v7637_v11 = vpop.f32.mrb[17].mxu1  ;;  %7647 = vmatmul.mubr.msk.f32.vlgmr.msra.gmra.mrb[18].mxu1 %vm366_vm1, %v2346_v9  ;;  %7669 = vmatmul.mubr.msk.f32.vlgmr.msra.gmra.mrb[18].mxu0 %vm366_vm1, %v2346_v9 }
 0xaed   : > { %8392 = vmatpush3.bf16.msra.mxu1 %v9344_v7  ;;  %8404 = vmatpush3.bf16.msra.mxu0 %v9346_v8 }
 0xaee   : > { %8393 = vmatprep.subr.bf16.mxu1 %v9066_v3  ;;  %8405 = vmatprep.subr.bf16.mxu0 %v9066_v3 }
 0xaef   : > { %7657 = vmatprep.mubr.msk.f32.mxu1 %vm9067_vm0, %v9068_v6  ;;  %7679 = vmatprep.mubr.msk.f32.mxu0 %vm9067_vm0, %v9068_v6 }
 0xaf1   : > { %8395 = vmatpush3.bf16.msra.mxu1 %v9364_v16  ;;  %8407 = vmatpush3.bf16.msra.mxu0 %v9366_v18 }
 0xaf2   : > { %8408 = vmatprep.subr.bf16.mxu1 %v9066_v3  ;;  %8420 = vmatprep.subr.bf16.mxu0 %v9066_v3 }
 0xaf4   : > { %7658 = vmatmul.mubr.msk.f32.vlgmr.msra.gmra.mrb[18].mxu1 %vm366_vm1, %v9604_v55  ;;  %7680 = vmatmul.mubr.msk.f32.vlgmr.msra.gmra.mrb[18].mxu0 %vm366_vm1, %v9604_v55 }
 0xaf5   : > { %8410 = vmatpush3.bf16.msra.mxu1 %v9388_v26  ;;  %8422 = vmatpush3.bf16.msra.mxu0 %v9390_v27 }
 0xaf6   : > { %8411 = vmatprep.subr.bf16.mxu1 %v9066_v3  ;;  %8423 = vmatprep.subr.bf16.mxu0 %v9066_v3 }
 0xaf7   : > { %7690 = vmatprep.mubr.msk.f32.mxu1 %vm9067_vm0, %v9068_v6  ;;  %7712 = vmatprep.mubr.msk.f32.mxu0 %vm9067_vm0, %v9068_v6 }
 0xaf9   : > { %8413 = vmatpush3.bf16.msra.mxu1 %v9412_v32  ;;  %8425 = vmatpush3.bf16.msra.mxu0 %v9414_v33 }
 0xafa   : > { %8414 = vmatprep.subr.bf16.mxu1 %v9066_v3  ;;  %8426 = vmatprep.subr.bf16.mxu0 %v9066_v3 }
 0xafc   : > { %7691 = vmatmul.mubr.msk.f32.vlgmr.msra.gmra.mrb[20].mxu1 %vm366_vm1, %v2346_v9  ;;  %7713 = vmatmul.mubr.msk.f32.vlgmr.msra.gmra.mrb[20].mxu0 %vm366_vm1, %v2346_v9 }
 0xafd   : > { %8416 = vmatpush3.bf16.msra.mxu1 %v9436_v38  ;;  %8428 = vmatpush3.bf16.msra.mxu0 %v9438_v39 }
 0xafe   : > { %8417 = vmatprep.subr.bf16.mxu1 %v9066_v3  ;;  %8429 = vmatprep.subr.bf16.mxu0 %v9066_v3 }
 0xaff   : > { %7701 = vmatprep.mubr.msk.f32.mxu1 %vm9067_vm0, %v9068_v6  ;;  %7723 = vmatprep.mubr.msk.f32.mxu0 %vm9067_vm0, %v9068_v6 }
 0xb01   : > { %8419 = vmatpush3.bf16.msra.mxu1 %v9458_v44  ;;  %8431 = vmatpush3.bf16.msra.mxu0 %v9460_v46 }
 0xb02   : > { %8432 = vmatprep.subr.bf16.mxu1 %v9066_v3  ;;  %7737 = vmatprep.subr.mxu0 %v9068_v6 }
 0xb04   : > { %7702 = vmatmul.mubr.msk.f32.vlgmr.msra.gmra.mrb[20].mxu1 %vm366_vm1, %v9604_v55  ;;  %7724 = vmatmul.mubr.msk.f32.vlgmr.msra.gmra.mrb[20].mxu0 %vm366_vm1, %v9604_v55 }
 0xb05   : > { %8434 = vmatpush3.bf16.msra.mxu1 %v9214_v17  ;;  %7734 = vmatprep.mubr.msk.f32.mxu1 %vm9067_vm0, %v9068_v6 }
 0xb06   : > { %8435 = vmatprep.subr.bf16.mxu1 %v9066_v3  ;;  %7738 = vmatpush3.msra.mxu0 %v9281_v45 }
 0xb07   : > { %7739 = vmatprep.mubr.msk.f32.mxu0 %vm9067_vm0, %v9068_v6  ;;  %8438 = vmatprep.subr.bf16.mxu0 %v9066_v3 }
 0xb09   : > { %8437 = vmatpush3.bf16.msra.mxu1 %v9220_v20 }
 0xb0a   : > { %8450 = vmatprep.subr.bf16.mxu1 %v9066_v3 }
 0xbc7   : > { %v2490_v12 = vpop.f32.mrb[18].mxu1  ;;  %v2632_v13 = vpop.f32.mrb[18].mxu0 }
 0xbc8   : > { %v8710_v14 = vadd.f32 %v2490_v12, %v9493_v51  ;;  %v8711_v15 = vadd.f32 %v2632_v13, %v9496_v52  ;;  %v7659_v19 = vpop.f32.mrb[19].mxu1  ;;  %v7681_v22 = vpop.f32.mrb[19].mxu0 }
 0xbca   : > { %v6901_v24 = vmul.f32 -1.442695, %v8710_v14  ;;  %v6902_v23 = vmul.f32 -1.442695, %v8711_v15 }
 0xbcc   : > { %8884 = vpow2.f32 %v6901_v24 }
 0xbcd   : > { %8886 = vpow2.f32 %v6902_v23 }
 0xbd6   : > { %v8885_v25 = vpop.eup %8884 }
 0xbd7   : > { %v8887_v63 = vpop.eup %8886  ;;  %v2924_v28 = vadd.f32 1.0, %v8885_v25  ;;  %v2774_v29 = vpop.f32.mrb[20].mxu1 }
 0xbd8   : > { %v2916_v30 = vpop.f32.mrb[20].mxu0  ;;  %v2930_v31 = vadd.f32 1.0, %v8887_v63  ;;  %v8712_v35 = vadd.f32 %v2774_v29, %v9507_v2  ;;  %v7703_v37 = vpop.f32.mrb[21].mxu1 }
 0xbd9   : > { %v8713_v36 = vadd.f32 %v2916_v30, %v9510_v4  ;;  %v7725_v40 = vpop.f32.mrb[21].mxu0  ;;  %8888 = vrcp.f32 %v2924_v28 }
 0xbda   : > { %8890 = vrcp.f32 %v2930_v31 }
 0xbdb   : > { %v6903_v41 = vmul.f32 -1.442695, %v8713_v36  ;;  %8892 = vtanh.f32 %v8712_v35 }
 0xbdd   : > { %8894 = vpow2.f32 %v6903_v41 }
 0xbe3   : > { %v8889_v42 = vpop.eup %8888 }
 0xbe4   : > { %v8891_v47 = vpop.eup %8890 }
 0xbe5   : > { %v8893_v50 = vpop.eup %8892  ;;  %v2940_v54 = vmul.f32 %v8891_v47, %v9600_v43 }
 0xbe6   : > { %v2941_v34 = vmul.f32 %v8893_v50, %v8889_v42 }
 0xbe7   : > { %v8895_v55 = vpop.eup %8894 }
 0xbe8   : > { %v2937_v56 = vadd.f32 1.0, %v8895_v55  ;;  %v9686_v57 = vadd.f32 %v2941_v34, %v2940_v54 }
 0xbea   : > { %8896 = vrcp.f32 %v2937_v56 }
 0xbeb   : > { %8898 = vtanh.f32 %v9686_v57 }
 0xbf4   : > { %v8897_v59 = vpop.eup %8896 }
 0xbf5   : > { %v8899_v60 = vpop.eup %8898 }
 0xbf6   : > { %v2944_v61 = vmul.f32 %v8899_v60, %v8897_v59 }
 0xbf8   : > { %v9690_v0 = vadd.f32 %v2944_v61, %v9197_v10 }
 0xbfa   : > { %7735 = vmatmul.mubr.msk.f32.vlgmr.msra.gmra.mrb[22].mxu1 %vm366_vm1, %v9690_v0 }
 0xbfb   : > { %8452 = vmatpush3.bf16.msra.mxu1 %v9291_v48  ;;  %7772 = vmatprep.mubr.msk.f32.mxu1 %vm9067_vm0, %v9068_v6 }
 0xbfc   : > { %8453 = vmatprep.subr.bf16.mxu1 %v9066_v3 }
 0xbff   : > { %8455 = vmatpush3.bf16.msra.mxu1 %v9303_v53 }
 0xc00   : > { %8456 = vmatprep.subr.bf16.mxu1 %v9066_v3 }
 0xccd   : > { %v3015_v43 = vpop.f32.mrb[22].mxu1 }
 0xcce   : > { %v7736_v21 = vpop.f32.mrb[23].mxu1  ;;  %v3019_v49 = vsel %vm759_vm2, %v3015_v43, -inf }
 0xccf   : > { %3020 = vmax.xlane.f32.xlu0 %v3019_v49 }
 0xd5c   : > { %v3021_v10 = vpop.xlane.xlu0 %3020 }
 0xd5d   : > { %v3022_v1 = vsub.f32 %v3015_v43, %v3021_v10 }
 0xd5f   : > { %v3023_v5 = vmul.f32 1.442695, %v3022_v1  ;;  %v9776_v1 = vld [vmem:[%s9193_s15] sm:$0xff]  ;;  %s295_s15 = sand.u32 1, %s9056_s25  }
 0xd60   : > { %s6713_s13 = scalar_lea.sflag [#allocation3], %s295_s15 }
 0xd61   : > { %8900 = vpow2.f32 %v3023_v5 }
 0xd6b   : > { %v8901_v9 = vpop.eup %8900 }
 0xd6c   : > { %v3025_v11 = vsel %vm759_vm2, %v8901_v9, 0.0 }
 0xd6d   : > { %3026 = vadd.xlane.f32.xlu1 %v3025_v11 }
 0xdfa   : > { %v3027_v12 = vpop.xlane.xlu1 %3026 }
 0xdfb   : > { %8902 = vrcp.f32 %v3027_v12 }
 0xe05   : > { %v8903_v13 = vpop.eup %8902 }
 0xe06   : > { %v3029_v14 = vmul.f32 %v8903_v13, %v8901_v9 }
 0xe08   : > { %7740 = vmatmul.mubr.msk.f32.vlgmr.msra.gmra.mrb[22].mxu0 %vm759_vm2, %v3029_v14 }
 0xe09   : > { %8440 = vmatpush3.bf16.msra.mxu0 %v9313_v58  ;;  %7750 = vmatprep.mubr.msk.f32.mxu0 %vm9067_vm0, %v9068_v6 }
 0xe0a   : > { %8441 = vmatprep.subr.bf16.mxu0 %v9066_v3 }
 0xe0d   : > { %8443 = vmatpush3.bf16.msra.mxu0 %v9323_v62 }
 0xe0e   : > { %8444 = vmatprep.subr.bf16.mxu0 %v9066_v3 }
 0xedb   : > { %v3099_v15 = vpop.f32.mrb[22].mxu0 }
 0xedc   : > { %v7741_v19 = vpop.f32.mrb[23].mxu0  ;;  %7751 = vmatmul.mubr.msk.f32.vlgmr.msra.gmra.mrb[24].mxu0 %vm366_vm1, %v3099_v15  ;;  %7773 = vmatmul.mubr.msk.f32.vlgmr.msra.gmra.mrb[24].mxu1 %vm366_vm1, %v3099_v15 }
 0xedd   : > { %8446 = vmatpush3.bf16.msra.mxu0 %v9344_v7  ;;  %8458 = vmatpush3.bf16.msra.mxu1 %v9346_v8 }
 0xede   : > { %8447 = vmatprep.subr.bf16.mxu0 %v9066_v3  ;;  %8459 = vmatprep.subr.bf16.mxu1 %v9066_v3 }
 0xedf   : > { %7761 = vmatprep.mubr.msk.f32.mxu0 %vm9067_vm0, %v9068_v6  ;;  %7783 = vmatprep.mubr.msk.f32.mxu1 %vm9067_vm0, %v9068_v6 }
 0xee1   : > { %8449 = vmatpush3.bf16.msra.mxu0 %v9364_v16  ;;  %8461 = vmatpush3.bf16.msra.mxu1 %v9366_v18 }
 0xee2   : > { %8462 = vmatprep.subr.bf16.mxu0 %v9066_v3  ;;  %8474 = vmatprep.subr.bf16.mxu1 %v9066_v3 }
 0xee4   : > { %7762 = vmatmul.mubr.msk.f32.vlgmr.msra.gmra.mrb[24].mxu0 %vm366_vm1, %v9690_v0  ;;  %7784 = vmatmul.mubr.msk.f32.vlgmr.msra.gmra.mrb[24].mxu1 %vm366_vm1, %v9690_v0 }
 0xee5   : > { %8464 = vmatpush3.bf16.msra.mxu0 %v9388_v26  ;;  %8476 = vmatpush3.bf16.msra.mxu1 %v9390_v27 }
 0xee6   : > { %8465 = vmatprep.subr.bf16.mxu0 %v9066_v3  ;;  %8477 = vmatprep.subr.bf16.mxu1 %v9066_v3 }
 0xee7   : > { %7794 = vmatprep.mubr.msk.f32.mxu0 %vm9067_vm0, %v9068_v6  ;;  %7816 = vmatprep.mubr.msk.f32.mxu1 %vm9067_vm0, %v9068_v6 }
 0xee9   : > { %8467 = vmatpush3.bf16.msra.mxu0 %v9412_v32  ;;  %8479 = vmatpush3.bf16.msra.mxu1 %v9414_v33 }
 0xeea   : > { %8468 = vmatprep.subr.bf16.mxu0 %v9066_v3  ;;  %8480 = vmatprep.subr.bf16.mxu1 %v9066_v3 }
 0xeec   : > { %7795 = vmatmul.mubr.msk.f32.vlgmr.msra.gmra.mrb[26].mxu0 %vm366_vm1, %v3099_v15  ;;  %7817 = vmatmul.mubr.msk.f32.vlgmr.msra.gmra.mrb[26].mxu1 %vm366_vm1, %v3099_v15 }
 0xeed   : > { %8470 = vmatpush3.bf16.msra.mxu0 %v9436_v38  ;;  %8482 = vmatpush3.bf16.msra.mxu1 %v9438_v39 }
 0xeee   : > { %8471 = vmatprep.subr.bf16.mxu0 %v9066_v3  ;;  %8483 = vmatprep.subr.bf16.mxu1 %v9066_v3 }
 0xeef   : > { %7805 = vmatprep.mubr.msk.f32.mxu0 %vm9067_vm0, %v9068_v6  ;;  %7827 = vmatprep.mubr.msk.f32.mxu1 %vm9067_vm0, %v9068_v6 }
 0xef1   : > { %8473 = vmatpush3.bf16.msra.mxu0 %v9458_v44  ;;  %8485 = vmatpush3.bf16.msra.mxu1 %v9460_v46 }
 0xef2   : > { %8486 = vmatprep.subr.bf16.mxu0 %v9066_v3  ;;  %7841 = vmatprep.subr.mxu1 %v9068_v6 }
 0xef4   : > { %7806 = vmatmul.mubr.msk.f32.vlgmr.msra.gmra.mrb[26].mxu0 %vm366_vm1, %v9690_v0  ;;  %7828 = vmatmul.mubr.msk.f32.vlgmr.msra.gmra.mrb[26].mxu1 %vm366_vm1, %v9690_v0 }
 0xef5   : > { %8488 = vmatpush3.bf16.msra.mxu0 %v9214_v17  ;;  %7838 = vmatprep.mubr.msk.f32.mxu0 %vm9067_vm0, %v9068_v6 }
 0xef6   : > { %8489 = vmatprep.subr.bf16.mxu0 %v9066_v3  ;;  %7842 = vmatpush3.msra.mxu1 %v9281_v45 }
 0xef7   : > { %7843 = vmatprep.mubr.msk.f32.mxu1 %vm9067_vm0, %v9068_v6  ;;  %8492 = vmatprep.subr.bf16.mxu1 %v9066_v3 }
 0xef9   : > { %8491 = vmatpush3.bf16.msra.mxu0 %v9220_v20 }
 0xefa   : > { %8504 = vmatprep.subr.bf16.mxu0 %v9066_v3 }
 0xfb7   : > { %v3243_v22 = vpop.f32.mrb[24].mxu0  ;;  %v3385_v24 = vpop.f32.mrb[24].mxu1 }
 0xfb8   : > { %v8714_v23 = vadd.f32 %v3243_v22, %v9493_v51  ;;  %v8715_v25 = vadd.f32 %v3385_v24, %v9496_v52  ;;  %v7763_v63 = vpop.f32.mrb[25].mxu0  ;;  %v7785_v28 = vpop.f32.mrb[25].mxu1 }
 0xfb9   : > { %v9851_v28 = vld [vmem:[%s9278_s20] sm:$0xff]  ;;  %s6813_s20 = sshll.u32 %s295_s15, 3 }
 0xfba   : > { %v6914_v29 = vmul.f32 -1.442695, %v8714_v23  ;;  %v6915_v30 = vmul.f32 -1.442695, %v8715_v25  ;;  %s297_s23 = scalar_lea.vmem [#allocation2], %s6813_s20 }
 0xfbb   : > { %s6726_s29 = sshll.u32 %s297_s23, 4  ;;  %s10118_s29 = int_to_ptr.vmem [resolvable:$true] %s6726_s29 }
 0xfbc   : > { %8904 = vpow2.f32 %v6914_v29  ;;  %s9002_s14 = scalar_lea.vmem %s10118_s29, 128  ;;  %p9009_p0 = scmp.lt.s32.totalorder %s10118_s29, %s9007_s16 }
 0xfbd   : > { %8906 = vpow2.f32 %v6915_v30  ;;  %p9003_p11 = scmp.ne.s32.totalorder %s10118_s29, %s9002_s14  ;;  %p9010_p1 = scmp.lt.s32.totalorder %s9008_s17, %s9002_s14 }
 0xfbf   : > { %p9004_p12 = pnand %p9003_p11, %p9148_p5  ;;  %p9011_p2 = por %p9010_p1, %p9009_p0 }
 0xfc1   : > { %p9005_p13 = pneg %p9004_p12 }
 0xfc3   : > { %p9012_p3 = pnand %p9011_p2, %p9005_p13 }
 0xfc6   : > { %v8905_v45 = vpop.eup %8904 }
 0xfc7   : > { %v8907_v31 = vpop.eup %8906  ;;  %v3677_v35 = vadd.f32 1.0, %v8905_v45  ;;  %v3527_v36 = vpop.f32.mrb[26].mxu0 }
 0xfc8   : > { %v3669_v37 = vpop.f32.mrb[26].mxu1  ;;  %v3683_v40 = vadd.f32 1.0, %v8907_v31  ;;  %v8716_v41 = vadd.f32 %v3527_v36, %v9507_v2  ;;  %v7807_v47 = vpop.f32.mrb[27].mxu0 }
 0xfc9   : > { %v8717_v42 = vadd.f32 %v3669_v37, %v9510_v4  ;;  %v7829_v50 = vpop.f32.mrb[27].mxu1  ;;  %8908 = vrcp.f32 %v3677_v35 }
 0xfca   : > { %8910 = vrcp.f32 %v3683_v40 }
 0xfcb   : > { %v6916_v54 = vmul.f32 -1.442695, %v8717_v42  ;;  %8912 = vtanh.f32 %v8716_v41 }
 0xfcd   : > { %8914 = vpow2.f32 %v6916_v54 }
 0xfd3   : > { %v8909_v55 = vpop.eup %8908 }
 0xfd4   : > { %v8911_v34 = vpop.eup %8910 }
 0xfd5   : > { %v8913_v56 = vpop.eup %8912  ;;  %v3693_v59 = vmul.f32 %v8911_v34, %v9686_v57 }
 0xfd6   : > { %v3694_v61 = vmul.f32 %v8913_v56, %v8909_v55 }
 0xfd7   : > { %v8915_v60 = vpop.eup %8914 }
 0xfd8   : > { %v3690_v0 = vadd.f32 1.0, %v8915_v60  ;;  %v9772_v43 = vadd.f32 %v3694_v61, %v3693_v59 }
 0xfda   : > { %8916 = vrcp.f32 %v3690_v0 }
 0xfdb   : > { %8918 = vtanh.f32 %v9772_v43 }
 0xfe4   : > { %v8917_v21 = vpop.eup %8916 }
 0xfe5   : > { %v8919_v49 = vpop.eup %8918 }
 0xfe6   : > { %v3697_v10 = vmul.f32 %v8919_v49, %v8917_v21 }
 0xfe8   : > { %v9779_v5 = vadd.f32 %v9776_v1, %v3697_v10 }
 0xfea   : > { %7839 = vmatmul.mubr.msk.f32.vlgmr.msra.gmra.mrb[28].mxu0 %vm366_vm1, %v9779_v5 }
 0xfeb   : > { %8506 = vmatpush3.bf16.msra.mxu0 %v9291_v48  ;;  %7876 = vmatprep.mubr.msk.f32.mxu0 %vm9067_vm0, %v9068_v6 }
 0xfec   : > { %8507 = vmatprep.subr.bf16.mxu0 %v9066_v3 }
 0xfef   : > { %8509 = vmatpush3.bf16.msra.mxu0 %v9303_v53 }
 0xff0   : > { %8510 = vmatprep.subr.bf16.mxu0 %v9066_v3 }
0x10bd   : > { %v3768_v57 = vpop.f32.mrb[28].mxu0 }
0x10be   : > { %v7840_v9 = vpop.f32.mrb[29].mxu0  ;;  %v3772_v11 = vsel %vm759_vm2, %v3768_v57, -inf }
0x10bf   : > { %3773 = vmax.xlane.f32.xlu0 %v3772_v11 }
0x114c   : > { %v3774_v12 = vpop.xlane.xlu0 %3773 }
0x114d   : > { %v3775_v13 = vsub.f32 %v3768_v57, %v3774_v12 }
0x114f   : > { %v3776_v14 = vmul.f32 1.442695, %v3775_v13 }
0x1151   : > { %8920 = vpow2.f32 %v3776_v14 }
0x115b   : > { %v8921_v15 = vpop.eup %8920 }
0x115c   : > { %v3778_v19 = vsel %vm759_vm2, %v8921_v15, 0.0 }
0x115d   : > { %3779 = vadd.xlane.f32.xlu1 %v3778_v19 }
0x11ea   : > { %v3780_v22 = vpop.xlane.xlu1 %3779 }
0x11eb   : > { %8922 = vrcp.f32 %v3780_v22 }
0x11f5   : > { %v8923_v24 = vpop.eup %8922 }
0x11f6   : > { %v3782_v23 = vmul.f32 %v8923_v24, %v8921_v15 }
0x11f8   : > { %7844 = vmatmul.mubr.msk.f32.vlgmr.msra.gmra.mrb[28].mxu1 %vm759_vm2, %v3782_v23 }
0x11f9   : > { %8494 = vmatpush3.bf16.msra.mxu1 %v9313_v58  ;;  %7854 = vmatprep.mubr.msk.f32.mxu1 %vm9067_vm0, %v9068_v6 }
0x11fa   : > { %8495 = vmatprep.subr.bf16.mxu1 %v9066_v3 }
0x11fd   : > { %8497 = vmatpush3.bf16.msra.mxu1 %v9323_v62 }
0x11fe   : > { %8498 = vmatprep.subr.bf16.mxu1 %v9066_v3 }
0x12cb   : > { %v3852_v25 = vpop.f32.mrb[28].mxu1 }
0x12cc   : > { %v7845_v63 = vpop.f32.mrb[29].mxu1  ;;  %7855 = vmatmul.mubr.msk.f32.vlgmr.msra.gmra.mrb[30].mxu1 %vm366_vm1, %v3852_v25  ;;  %7877 = vmatmul.mubr.msk.f32.vlgmr.msra.gmra.mrb[30].mxu0 %vm366_vm1, %v3852_v25 }
0x12cd   : > { %8500 = vmatpush3.bf16.msra.mxu1 %v9344_v7  ;;  %8512 = vmatpush3.bf16.msra.mxu0 %v9346_v8 }
0x12ce   : > { %8501 = vmatprep.subr.bf16.mxu1 %v9066_v3  ;;  %8513 = vmatprep.subr.bf16.mxu0 %v9066_v3 }
0x12cf   : > { %7865 = vmatprep.mubr.msk.f32.mxu1 %vm9067_vm0, %v9068_v6  ;;  %7887 = vmatprep.mubr.msk.f32.mxu0 %vm9067_vm0, %v9068_v6 }
0x12d1   : > { %8503 = vmatpush3.bf16.msra.mxu1 %v9364_v16  ;;  %8515 = vmatpush3.bf16.msra.mxu0 %v9366_v18 }
0x12d2   : > { %8516 = vmatprep.subr.bf16.mxu1 %v9066_v3  ;;  %8528 = vmatprep.subr.bf16.mxu0 %v9066_v3 }
0x12d4   : > { %7866 = vmatmul.mubr.msk.f32.vlgmr.msra.gmra.mrb[30].mxu1 %vm366_vm1, %v9779_v5  ;;  %7888 = vmatmul.mubr.msk.f32.vlgmr.msra.gmra.mrb[30].mxu0 %vm366_vm1, %v9779_v5 }
0x12d5   : > { %8518 = vmatpush3.bf16.msra.mxu1 %v9388_v26  ;;  %8530 = vmatpush3.bf16.msra.mxu0 %v9390_v27 }
0x12d6   : > { %8519 = vmatprep.subr.bf16.mxu1 %v9066_v3  ;;  %8531 = vmatprep.subr.bf16.mxu0 %v9066_v3 }
0x12d7   : > { %7898 = vmatprep.mubr.msk.f32.mxu1 %vm9067_vm0, %v9068_v6  ;;  %7920 = vmatprep.mubr.msk.f32.mxu0 %vm9067_vm0, %v9068_v6 }
0x12d9   : > { %8521 = vmatpush3.bf16.msra.mxu1 %v9412_v32  ;;  %8533 = vmatpush3.bf16.msra.mxu0 %v9414_v33 }
0x12da   : > { %8522 = vmatprep.subr.bf16.mxu1 %v9066_v3  ;;  %8534 = vmatprep.subr.bf16.mxu0 %v9066_v3 }
0x12dc   : > { %7899 = vmatmul.mubr.msk.f32.vlgmr.msra.gmra.mrb[32].mxu1 %vm366_vm1, %v3852_v25  ;;  %7921 = vmatmul.mubr.msk.f32.vlgmr.msra.gmra.mrb[32].mxu0 %vm366_vm1, %v3852_v25 }
0x12dd   : > { %8524 = vmatpush3.bf16.msra.mxu1 %v9436_v38  ;;  %8536 = vmatpush3.bf16.msra.mxu0 %v9438_v39 }
0x12de   : > { %8525 = vmatprep.subr.bf16.mxu1 %v9066_v3  ;;  %8537 = vmatprep.subr.bf16.mxu0 %v9066_v3 }
0x12df   : > { %7909 = vmatprep.mubr.msk.f32.mxu1 %vm9067_vm0, %v9068_v6  ;;  %7931 = vmatprep.mubr.msk.f32.mxu0 %vm9067_vm0, %v9068_v6 }
0x12e1   : > { %8527 = vmatpush3.bf16.msra.mxu1 %v9458_v44  ;;  %8539 = vmatpush3.bf16.msra.mxu0 %v9460_v46 }
0x12e2   : > { %8540 = vmatprep.subr.bf16.mxu1 %v9066_v3  ;;  %7945 = vmatprep.subr.mxu0 %v9068_v6 }
0x12e4   : > { %7910 = vmatmul.mubr.msk.f32.vlgmr.msra.gmra.mrb[32].mxu1 %vm366_vm1, %v9779_v5  ;;  %7932 = vmatmul.mubr.msk.f32.vlgmr.msra.gmra.mrb[32].mxu0 %vm366_vm1, %v9779_v5 }
0x12e5   : > { %8542 = vmatpush3.bf16.msra.mxu1 %v9214_v17  ;;  %7942 = vmatprep.mubr.msk.f32.mxu1 %vm9067_vm0, %v9068_v6 }
0x12e6   : > { %8543 = vmatprep.subr.bf16.mxu1 %v9066_v3  ;;  %7946 = vmatpush3.msra.mxu0 %v9851_v28 }
0x12e7   : > { %7947 = vmatprep.mubr.msk.f32.mxu0 %vm9067_vm0, %v9068_v6  ;;  %8546 = vmatprep.subr.bf16.mxu0 %v9066_v3 }
0x12e9   : > { %8545 = vmatpush3.bf16.msra.mxu1 %v9220_v20 }
0x12ea   : > { %8558 = vmatprep.subr.bf16.mxu1 %v9066_v3 }
0x13a7   : > { %v3996_v29 = vpop.f32.mrb[30].mxu1  ;;  %v4138_v30 = vpop.f32.mrb[30].mxu0 }
0x13a8   : > { %v8718_v45 = vadd.f32 %v3996_v29, %v9493_v51  ;;  %v8719_v31 = vadd.f32 %v4138_v30, %v9496_v52  ;;  %v7867_v35 = vpop.f32.mrb[31].mxu1  ;;  %v7889_v36 = vpop.f32.mrb[31].mxu0 }
0x13aa   : > { %v6927_v37 = vmul.f32 -1.442695, %v8718_v45  ;;  %v6928_v40 = vmul.f32 -1.442695, %v8719_v31 }
0x13ac   : > { %8924 = vpow2.f32 %v6927_v37 }
0x13ad   : > { %8926 = vpow2.f32 %v6928_v40 }
0x13b6   : > { %v8925_v41 = vpop.eup %8924 }
0x13b7   : > { %v8927_v42 = vpop.eup %8926  ;;  %v4430_v47 = vadd.f32 1.0, %v8925_v41  ;;  %v4280_v50 = vpop.f32.mrb[32].mxu1 }
0x13b8   : > { %v4422_v54 = vpop.f32.mrb[32].mxu0  ;;  %v4436_v55 = vadd.f32 1.0, %v8927_v42  ;;  %v8720_v34 = vadd.f32 %v4280_v50, %v9507_v2  ;;  %v7911_v59 = vpop.f32.mrb[33].mxu1 }
0x13b9   : > { %v8721_v56 = vadd.f32 %v4422_v54, %v9510_v4  ;;  %v7933_v60 = vpop.f32.mrb[33].mxu0  ;;  %8928 = vrcp.f32 %v4430_v47 }
0x13ba   : > { %8930 = vrcp.f32 %v4436_v55 }
0x13bb   : > { %v6929_v61 = vmul.f32 -1.442695, %v8721_v56  ;;  %8932 = vtanh.f32 %v8720_v34 }
0x13bd   : > { %8934 = vpow2.f32 %v6929_v61 }
0x13c3   : > { %v8929_v0 = vpop.eup %8928 }
0x13c4   : > { %v8931_v21 = vpop.eup %8930 }
0x13c5   : > { %v8933_v49 = vpop.eup %8932  ;;  %v4446_v10 = vmul.f32 %v8931_v21, %v9772_v43 }
0x13c6   : > { %v4447_v57 = vmul.f32 %v8933_v49, %v8929_v0 }
0x13c7   : > { %v8935_v5 = vpop.eup %8934 }
0x13c8   : > { %v4443_v9 = vadd.f32 1.0, %v8935_v5  ;;  %v9864_v11 = vadd.f32 %v4447_v57, %v4446_v10 }
0x13ca   : > { %8936 = vrcp.f32 %v4443_v9 }
0x13cb   : > { %8938 = vtanh.f32 %v9864_v11 }
0x13d4   : > { %v8937_v12 = vpop.eup %8936 }
0x13d5   : > { %v8939_v13 = vpop.eup %8938 }
0x13d6   : > { %v4450_v14 = vmul.f32 %v8939_v13, %v8937_v12 }
0x13d8   : > { %v9868_v15 = vadd.f32 %v9776_v1, %v4450_v14 }
0x13da   : > { %7943 = vmatmul.mubr.msk.f32.vlgmr.msra.gmra.mrb[34].mxu1 %vm366_vm1, %v9868_v15 }
0x13db   : > { %8560 = vmatpush3.bf16.msra.mxu1 %v9291_v48  ;;  %7980 = vmatprep.mubr.msk.f32.mxu1 %vm9067_vm0, %v9068_v6 }
0x13dc   : > { %8561 = vmatprep.subr.bf16.mxu1 %v9066_v3 }
0x13df   : > { %8563 = vmatpush3.bf16.msra.mxu1 %v9303_v53 }
0x13e0   : > { %8564 = vmatprep.subr.bf16.mxu1 %v9066_v3 }
0x14ad   : > { %v4521_v43 = vpop.f32.mrb[34].mxu1 }
0x14ae   : > { %v7944_v19 = vpop.f32.mrb[35].mxu1  ;;  %v4525_v22 = vsel %vm759_vm2, %v4521_v43, -inf }
0x14af   : > { %4526 = vmax.xlane.f32.xlu0 %v4525_v22 }
0x153c   : > { %v4527_v24 = vpop.xlane.xlu0 %4526 }
0x153d   : > { %v4528_v23 = vsub.f32 %v4521_v43, %v4527_v24 }
0x153f   : > { %v4529_v25 = vmul.f32 1.442695, %v4528_v23 }
0x1541   : > { %8940 = vpow2.f32 %v4529_v25 }
0x154b   : > { %v8941_v63 = vpop.eup %8940 }
0x154c   : > { %v4531_v29 = vsel %vm759_vm2, %v8941_v63, 0.0 }
0x154d   : > { %4532 = vadd.xlane.f32.xlu1 %v4531_v29 }
0x15da   : > { %v4533_v30 = vpop.xlane.xlu1 %4532 }
0x15db   : > { %8942 = vrcp.f32 %v4533_v30 }
0x15e5   : > { %v8943_v45 = vpop.eup %8942 }
0x15e6   : > { %v4535_v31 = vmul.f32 %v8943_v45, %v8941_v63 }
0x15e8   : > { %7948 = vmatmul.mubr.msk.f32.vlgmr.msra.gmra.mrb[34].mxu0 %vm759_vm2, %v4535_v31 }
0x15e9   : > { %8548 = vmatpush3.bf16.msra.mxu0 %v9313_v58  ;;  %7958 = vmatprep.mubr.msk.f32.mxu0 %vm9067_vm0, %v9068_v6 }
0x15ea   : > { %8549 = vmatprep.subr.bf16.mxu0 %v9066_v3 }
0x15ed   : > { %8551 = vmatpush3.bf16.msra.mxu0 %v9323_v62 }
0x15ee   : > { %8552 = vmatprep.subr.bf16.mxu0 %v9066_v3 }
0x16bb   : > { %v4605_v35 = vpop.f32.mrb[34].mxu0 }
0x16bc   : > { %v7949_v36 = vpop.f32.mrb[35].mxu0  ;;  %7959 = vmatmul.mubr.msk.f32.vlgmr.msra.gmra.mrb[36].mxu0 %vm366_vm1, %v4605_v35  ;;  %7981 = vmatmul.mubr.msk.f32.vlgmr.msra.gmra.mrb[36].mxu1 %vm366_vm1, %v4605_v35 }
0x16bd   : > { %8554 = vmatpush3.bf16.msra.mxu0 %v9344_v7  ;;  %8566 = vmatpush3.bf16.msra.mxu1 %v9346_v8 }
0x16be   : > { %8555 = vmatprep.subr.bf16.mxu0 %v9066_v3  ;;  %8567 = vmatprep.subr.bf16.mxu1 %v9066_v3 }
0x16bf   : > { %7969 = vmatprep.mubr.msk.f32.mxu0 %vm9067_vm0, %v9068_v6  ;;  %7991 = vmatprep.mubr.msk.f32.mxu1 %vm9067_vm0, %v9068_v6 }
0x16c1   : > { %8557 = vmatpush3.bf16.msra.mxu0 %v9364_v16  ;;  %8569 = vmatpush3.bf16.msra.mxu1 %v9366_v18 }
0x16c2   : > { %8570 = vmatprep.subr.bf16.mxu0 %v9066_v3  ;;  %8582 = vmatprep.subr.bf16.mxu1 %v9066_v3 }
0x16c4   : > { %7970 = vmatmul.mubr.msk.f32.vlgmr.msra.gmra.mrb[36].mxu0 %vm366_vm1, %v9868_v15  ;;  %7992 = vmatmul.mubr.msk.f32.vlgmr.msra.gmra.mrb[36].mxu1 %vm366_vm1, %v9868_v15 }
0x16c5   : > { %8572 = vmatpush3.bf16.msra.mxu0 %v9388_v26  ;;  %8584 = vmatpush3.bf16.msra.mxu1 %v9390_v27 }
0x16c6   : > { %8573 = vmatprep.subr.bf16.mxu0 %v9066_v3  ;;  %8585 = vmatprep.subr.bf16.mxu1 %v9066_v3 }
0x16c7   : > { %8002 = vmatprep.mubr.msk.f32.mxu0 %vm9067_vm0, %v9068_v6  ;;  %8024 = vmatprep.mubr.msk.f32.mxu1 %vm9067_vm0, %v9068_v6 }
0x16c9   : > { %8575 = vmatpush3.bf16.msra.mxu0 %v9412_v32  ;;  %8587 = vmatpush3.bf16.msra.mxu1 %v9414_v33 }
0x16ca   : > { %8576 = vmatprep.subr.bf16.mxu0 %v9066_v3  ;;  %8588 = vmatprep.subr.bf16.mxu1 %v9066_v3 }
0x16cc   : > { %8003 = vmatmul.mubr.msk.f32.vlgmr.msra.gmra.mrb[38].mxu0 %vm366_vm1, %v4605_v35  ;;  %8025 = vmatmul.mubr.msk.f32.vlgmr.msra.gmra.mrb[38].mxu1 %vm366_vm1, %v4605_v35 }
0x16cd   : > { %8578 = vmatpush3.bf16.msra.mxu0 %v9436_v38  ;;  %8590 = vmatpush3.bf16.msra.mxu1 %v9438_v39 }
0x16ce   : > { %8579 = vmatprep.subr.bf16.mxu0 %v9066_v3  ;;  %8591 = vmatprep.subr.bf16.mxu1 %v9066_v3 }
0x16cf   : > { %8013 = vmatprep.mubr.msk.f32.mxu0 %vm9067_vm0, %v9068_v6  ;;  %8035 = vmatprep.mubr.msk.f32.mxu1 %vm9067_vm0, %v9068_v6 }
0x16d1   : > { %8581 = vmatpush3.bf16.msra.mxu0 %v9458_v44  ;;  %8593 = vmatpush3.bf16.msra.mxu1 %v9460_v46 }
0x16d2   : > { %8594 = vmatprep.subr.bf16.mxu0 %v9066_v3  ;;  %8049 = vmatprep.subr.mxu1 %v9068_v6 }
0x16d4   : > { %8014 = vmatmul.mubr.msk.f32.vlgmr.msra.gmra.mrb[38].mxu0 %vm366_vm1, %v9868_v15  ;;  %8036 = vmatmul.mubr.msk.f32.vlgmr.msra.gmra.mrb[38].mxu1 %vm366_vm1, %v9868_v15 }
0x16d5   : > { %8596 = vmatpush3.bf16.msra.mxu0 %v9214_v17  ;;  %8046 = vmatprep.mubr.msk.f32.mxu0 %vm9067_vm0, %v9068_v6 }
0x16d6   : > { %8597 = vmatprep.subr.bf16.mxu0 %v9066_v3  ;;  %8050 = vmatpush3.msra.mxu1 %v9851_v28 }
0x16d7   : > { %8051 = vmatprep.mubr.msk.f32.mxu1 %vm9067_vm0, %v9068_v6  ;;  %8600 = vmatprep.subr.bf16.mxu1 %v9066_v3 }
0x16d9   : > { %8599 = vmatpush3.bf16.msra.mxu0 %v9220_v20 }
0x16da   : > { %8612 = vmatprep.subr.bf16.mxu0 %v9066_v3 }
0x1797   : > { %v4749_v37 = vpop.f32.mrb[36].mxu0  ;;  %v4891_v40 = vpop.f32.mrb[36].mxu1 }
0x1798   : > { %v8722_v41 = vadd.f32 %v4749_v37, %v9493_v51  ;;  %v8723_v42 = vadd.f32 %v4891_v40, %v9496_v52  ;;  %v7971_v47 = vpop.f32.mrb[37].mxu0  ;;  %v7993_v50 = vpop.f32.mrb[37].mxu1 }
0x179a   : > { %v6940_v54 = vmul.f32 -1.442695, %v8722_v41  ;;  %v6941_v55 = vmul.f32 -1.442695, %v8723_v42 }
0x179c   : > { %8944 = vpow2.f32 %v6940_v54 }
0x179d   : > { %8946 = vpow2.f32 %v6941_v55 }
0x17a6   : > { %v8945_v34 = vpop.eup %8944 }
0x17a7   : > { %v8947_v56 = vpop.eup %8946  ;;  %v5183_v59 = vadd.f32 1.0, %v8945_v34  ;;  %v5033_v60 = vpop.f32.mrb[38].mxu0 }
0x17a8   : > { %v5175_v61 = vpop.f32.mrb[38].mxu1  ;;  %v5189_v0 = vadd.f32 1.0, %v8947_v56  ;;  %v8724_v21 = vadd.f32 %v5033_v60, %v9507_v2  ;;  %v8015_v10 = vpop.f32.mrb[39].mxu0 }
0x17a9   : > { %v8725_v49 = vadd.f32 %v5175_v61, %v9510_v4  ;;  %v8037_v5 = vpop.f32.mrb[39].mxu1  ;;  %8948 = vrcp.f32 %v5183_v59 }
0x17aa   : > { %8950 = vrcp.f32 %v5189_v0 }
0x17ab   : > { %v6942_v57 = vmul.f32 -1.442695, %v8725_v49  ;;  %8952 = vtanh.f32 %v8724_v21 }
0x17ad   : > { %8954 = vpow2.f32 %v6942_v57 }
0x17b3   : > { %v8949_v9 = vpop.eup %8948 }
0x17b4   : > { %v8951_v12 = vpop.eup %8950 }
0x17b5   : > { %v8953_v13 = vpop.eup %8952  ;;  %v5199_v14 = vmul.f32 %v8951_v12, %v9864_v11 }
0x17b6   : > { %v5200_v43 = vmul.f32 %v8953_v13, %v8949_v9 }
0x17b7   : > { %v8955_v15 = vpop.eup %8954 }
0x17b8   : > { %v5196_v19 = vadd.f32 1.0, %v8955_v15  ;;  %v9950_v22 = vadd.f32 %v5200_v43, %v5199_v14 }
0x17ba   : > { %8956 = vrcp.f32 %v5196_v19 }
0x17bb   : > { %8958 = vtanh.f32 %v9950_v22 }
0x17c4   : > { %v8957_v24 = vpop.eup %8956 }
0x17c5   : > { %v8959_v23 = vpop.eup %8958 }
0x17c6   : > { %v5203_v25 = vmul.f32 %v8959_v23, %v8957_v24 }
0x17c8   : > { %v9954_v63 = vadd.f32 %v9776_v1, %v5203_v25 }
0x17ca   : > { %8047 = vmatmul.mubr.msk.f32.vlgmr.msra.gmra.mrb[40].mxu0 %vm366_vm1, %v9954_v63 }
0x17cb   : > { %8614 = vmatpush3.bf16.msra.mxu0 %v9291_v48  ;;  %8084 = vmatprep.mubr.msk.f32.mxu0 %vm9067_vm0, %v9068_v6 }
0x17cc   : > { %8615 = vmatprep.subr.bf16.mxu0 %v9066_v3 }
0x17cf   : > { %8617 = vmatpush3.bf16.msra.mxu0 %v9303_v53 }
0x17d0   : > { %8618 = vmatprep.subr.bf16.mxu0 %v9066_v3 }
0x189d   : > { %v5274_v11 = vpop.f32.mrb[40].mxu0 }
0x189e   : > { %v8048_v29 = vpop.f32.mrb[41].mxu0  ;;  %v5278_v30 = vsel %vm759_vm2, %v5274_v11, -inf }
0x189f   : > { %5279 = vmax.xlane.f32.xlu0 %v5278_v30 }
0x192c   : > { %v5280_v45 = vpop.xlane.xlu0 %5279 }
0x192d   : > { %v5281_v31 = vsub.f32 %v5274_v11, %v5280_v45 }
0x192f   : > { %v5282_v35 = vmul.f32 1.442695, %v5281_v31 }
0x1931   : > { %8960 = vpow2.f32 %v5282_v35 }
0x193b   : > { %v8961_v36 = vpop.eup %8960 }
0x193c   : > { %v5284_v37 = vsel %vm759_vm2, %v8961_v36, 0.0 }
0x193d   : > { %5285 = vadd.xlane.f32.xlu1 %v5284_v37 }
0x19ca   : > { %v5286_v40 = vpop.xlane.xlu1 %5285 }
0x19cb   : > { %8962 = vrcp.f32 %v5286_v40 }
0x19d5   : > { %v8963_v41 = vpop.eup %8962 }
0x19d6   : > { %v5288_v42 = vmul.f32 %v8963_v41, %v8961_v36 }
0x19d8   : > { %8052 = vmatmul.mubr.msk.f32.vlgmr.msra.gmra.mrb[40].mxu1 %vm759_vm2, %v5288_v42 }
0x19d9   : > { %8602 = vmatpush3.bf16.msra.mxu1 %v9313_v58  ;;  %8062 = vmatprep.mubr.msk.f32.mxu1 %vm9067_vm0, %v9068_v6 }
0x19da   : > { %8603 = vmatprep.subr.bf16.mxu1 %v9066_v3 }
0x19dd   : > { %8605 = vmatpush3.bf16.msra.mxu1 %v9323_v62 }
0x19de   : > { %8606 = vmatprep.subr.bf16.mxu1 %v9066_v3 }
0x1aab   : > { %v5358_v47 = vpop.f32.mrb[40].mxu1 }
0x1aac   : > { %v8053_v50 = vpop.f32.mrb[41].mxu1  ;;  %8063 = vmatmul.mubr.msk.f32.vlgmr.msra.gmra.mrb[42].mxu1 %vm366_vm1, %v5358_v47  ;;  %8085 = vmatmul.mubr.msk.f32.vlgmr.msra.gmra.mrb[42].mxu0 %vm366_vm1, %v5358_v47 }
0x1aad   : > { %8608 = vmatpush3.bf16.msra.mxu1 %v9344_v7  ;;  %8620 = vmatpush3.bf16.msra.mxu0 %v9346_v8 }
0x1aae   : > { %8609 = vmatprep.subr.bf16.mxu1 %v9066_v3  ;;  %8621 = vmatprep.subr.bf16.mxu0 %v9066_v3 }
0x1aaf   : > { %8073 = vmatprep.mubr.msk.f32.mxu1 %vm9067_vm0, %v9068_v6  ;;  %8095 = vmatprep.mubr.msk.f32.mxu0 %vm9067_vm0, %v9068_v6 }
0x1ab1   : > { %8611 = vmatpush3.bf16.msra.mxu1 %v9364_v16  ;;  %8623 = vmatpush3.bf16.msra.mxu0 %v9366_v18 }
0x1ab2   : > { %8624 = vmatprep.subr.bf16.mxu1 %v9066_v3  ;;  %8636 = vmatprep.subr.bf16.mxu0 %v9066_v3 }
0x1ab4   : > { %8074 = vmatmul.mubr.msk.f32.vlgmr.msra.gmra.mrb[42].mxu1 %vm366_vm1, %v9954_v63  ;;  %8096 = vmatmul.mubr.msk.f32.vlgmr.msra.gmra.mrb[42].mxu0 %vm366_vm1, %v9954_v63 }
0x1ab5   : > { %8626 = vmatpush3.bf16.msra.mxu1 %v9388_v26  ;;  %8638 = vmatpush3.bf16.msra.mxu0 %v9390_v27 }
0x1ab6   : > { %8627 = vmatprep.subr.bf16.mxu1 %v9066_v3  ;;  %8639 = vmatprep.subr.bf16.mxu0 %v9066_v3 }
0x1ab7   : > { %8106 = vmatprep.mubr.msk.f32.mxu1 %vm9067_vm0, %v9068_v6  ;;  %8128 = vmatprep.mubr.msk.f32.mxu0 %vm9067_vm0, %v9068_v6 }
0x1ab9   : > { %8629 = vmatpush3.bf16.msra.mxu1 %v9412_v32  ;;  %8641 = vmatpush3.bf16.msra.mxu0 %v9414_v33 }
0x1aba   : > { %8630 = vmatprep.subr.bf16.mxu1 %v9066_v3  ;;  %8642 = vmatprep.subr.bf16.mxu0 %v9066_v3 }
0x1abc   : > { %8107 = vmatmul.mubr.msk.f32.vlgmr.msra.gmra.mrb[44].mxu1 %vm366_vm1, %v5358_v47  ;;  %8129 = vmatmul.mubr.msk.f32.vlgmr.msra.gmra.mrb[44].mxu0 %vm366_vm1, %v5358_v47 }
0x1abd   : > { %8632 = vmatpush3.bf16.msra.mxu1 %v9436_v38  ;;  %8644 = vmatpush3.bf16.msra.mxu0 %v9438_v39 }
0x1abe   : > { %8633 = vmatprep.subr.bf16.mxu1 %v9066_v3  ;;  %8645 = vmatprep.subr.bf16.mxu0 %v9066_v3 }
0x1abf   : > { %8117 = vmatprep.mubr.msk.f32.mxu1 %vm9067_vm0, %v9068_v6  ;;  %8139 = vmatprep.mubr.msk.f32.mxu0 %vm9067_vm0, %v9068_v6 }
0x1ac1   : > { %8635 = vmatpush3.bf16.msra.mxu1 %v9458_v44  ;;  %8647 = vmatpush3.bf16.msra.mxu0 %v9460_v46 }
0x1ac2   : > { %8648 = vmatprep.subr.bf16.mxu1 %v9066_v3  ;;  %8153 = vmatprep.subr.mxu0 %v9068_v6 }
0x1ac4   : > { %8118 = vmatmul.mubr.msk.f32.vlgmr.msra.gmra.mrb[44].mxu1 %vm366_vm1, %v9954_v63  ;;  %8140 = vmatmul.mubr.msk.f32.vlgmr.msra.gmra.mrb[44].mxu0 %vm366_vm1, %v9954_v63 }
0x1ac5   : > { %8650 = vmatpush3.bf16.msra.mxu1 %v9214_v17  ;;  %8150 = vmatprep.mubr.msk.f32.mxu1 %vm9067_vm0, %v9068_v6 }
0x1ac6   : > { %8651 = vmatprep.subr.bf16.mxu1 %v9066_v3  ;;  %8154 = vmatpush3.msra.mxu0 %v9851_v28 }
0x1ac7   : > { %8155 = vmatprep.mubr.msk.f32.mxu0 %vm9067_vm0, %v9068_v6  ;;  %8654 = vmatprep.subr.bf16.mxu0 %v9066_v3 }
0x1ac9   : > { %8653 = vmatpush3.bf16.msra.mxu1 %v9220_v20 }
0x1aca   : > { %8666 = vmatprep.subr.bf16.mxu1 %v9066_v3 }
0x1b87   : > { %v5502_v54 = vpop.f32.mrb[42].mxu1  ;;  %v5644_v55 = vpop.f32.mrb[42].mxu0 }
0x1b88   : > { %v8726_v17 = vadd.f32 %v5502_v54, %v9493_v51  ;;  %v8727_v34 = vadd.f32 %v5644_v55, %v9496_v52  ;;  %v8075_v56 = vpop.f32.mrb[43].mxu1  ;;  %v8097_v59 = vpop.f32.mrb[43].mxu0 }
0x1b8a   : > { %v6953_v60 = vmul.f32 -1.442695, %v8726_v17  ;;  %v6954_v61 = vmul.f32 -1.442695, %v8727_v34 }
0x1b8c   : > { %8964 = vpow2.f32 %v6953_v60 }
0x1b8d   : > { %8966 = vpow2.f32 %v6954_v61 }
0x1b96   : > { %v8965_v28 = vpop.eup %8964 }
0x1b97   : > { %v8967_v0 = vpop.eup %8966  ;;  %v5936_v21 = vadd.f32 1.0, %v8965_v28  ;;  %v5786_v49 = vpop.f32.mrb[44].mxu1 }
0x1b98   : > { %v5928_v10 = vpop.f32.mrb[44].mxu0  ;;  %v5942_v20 = vadd.f32 1.0, %v8967_v0  ;;  %v8728_v5 = vadd.f32 %v5786_v49, %v9507_v2  ;;  %v8119_v9 = vpop.f32.mrb[45].mxu1 }
0x1b99   : > { %v8729_v57 = vadd.f32 %v5928_v10, %v9510_v4  ;;  %v8141_v12 = vpop.f32.mrb[45].mxu0  ;;  %8968 = vrcp.f32 %v5936_v21 }
0x1b9a   : > { %8970 = vrcp.f32 %v5942_v20 }
0x1b9b   : > { %v6955_v13 = vmul.f32 -1.442695, %v8729_v57  ;;  %8972 = vtanh.f32 %v8728_v5 }
0x1b9d   : > { %8974 = vpow2.f32 %v6955_v13 }
0x1ba3   : > { %v8969_v14 = vpop.eup %8968 }
0x1ba4   : > { %v8971_v15 = vpop.eup %8970 }
0x1ba5   : > { %v8973_v43 = vpop.eup %8972  ;;  %v5952_v19 = vmul.f32 %v8971_v15, %v9950_v22 }
0x1ba6   : > { %v5953_v23 = vmul.f32 %v8973_v43, %v8969_v14 }
0x1ba7   : > { %v8975_v24 = vpop.eup %8974 }
0x1ba8   : > { %v5949_v25 = vadd.f32 1.0, %v8975_v24  ;;  %v10036_v63 = vadd.f32 %v5953_v23, %v5952_v19 }
0x1baa   : > { %8976 = vrcp.f32 %v5949_v25 }
0x1bab   : > { %8978 = vtanh.f32 %v10036_v63 }
0x1bb4   : > { %v8977_v11 = vpop.eup %8976 }
0x1bb5   : > { %v8979_v29 = vpop.eup %8978 }
0x1bb6   : > { %v5956_v30 = vmul.f32 %v8979_v29, %v8977_v11 }
0x1bb8   : > { %v10040_v45 = vadd.f32 %v9776_v1, %v5956_v30 }
0x1bba   : > { %8151 = vmatmul.mubr.msk.f32.vlgmr.msra.gmra.mrb[46].mxu1 %vm366_vm1, %v10040_v45 }
0x1bbb   : > { %8668 = vmatpush3.bf16.msra.mxu1 %v9291_v48  ;;  %8188 = vmatprep.mubr.msk.f32.mxu1 %vm9067_vm0, %v9068_v6 }
0x1bbc   : > { %8669 = vmatprep.subr.bf16.mxu1 %v9066_v3 }
0x1bbf   : > { %8671 = vmatpush3.bf16.msra.mxu1 %v9303_v53 }
0x1bc0   : > { %8672 = vmatprep.subr.bf16.mxu1 %v9066_v3 }
0x1c8d   : > { %v6027_v22 = vpop.f32.mrb[46].mxu1 }
0x1c8e   : > { %v8152_v31 = vpop.f32.mrb[47].mxu1  ;;  %v6031_v35 = vsel %vm759_vm2, %v6027_v22, -inf }
0x1c8f   : > { %6032 = vmax.xlane.f32.xlu0 %v6031_v35 }
0x1d1c   : > { %v6033_v36 = vpop.xlane.xlu0 %6032 }
0x1d1d   : > { %v6034_v37 = vsub.f32 %v6027_v22, %v6033_v36 }
0x1d1f   : > { %v6035_v40 = vmul.f32 1.442695, %v6034_v37 }
0x1d21   : > { %8980 = vpow2.f32 %v6035_v40 }
0x1d2b   : > { %v8981_v41 = vpop.eup %8980 }
0x1d2c   : > { %v6037_v48 = vsel %vm759_vm2, %v8981_v41, 0.0 }
0x1d2d   : > { %6038 = vadd.xlane.f32.xlu1 %v6037_v48 }
0x1dba   : > { %v6039_v42 = vpop.xlane.xlu1 %6038 }
0x1dbb   : > { %8982 = vrcp.f32 %v6039_v42 }
0x1dc5   : > { %v8983_v47 = vpop.eup %8982 }
0x1dc6   : > { %v6041_v50 = vmul.f32 %v8983_v47, %v8981_v41 }
0x1dc8   : > { %8156 = vmatmul.mubr.msk.f32.vlgmr.msra.gmra.mrb[46].mxu0 %vm759_vm2, %v6041_v50 }
0x1dc9   : > { %8656 = vmatpush3.bf16.msra.mxu0 %v9313_v58  ;;  %8166 = vmatprep.mubr.msk.f32.mxu0 %vm9067_vm0, %v9068_v6 }
0x1dca   : > { %8657 = vmatprep.subr.bf16.mxu0 %v9066_v3 }
0x1dcd   : > { %8659 = vmatpush3.bf16.msra.mxu0 %v9323_v62 }
0x1dce   : > { %8660 = vmatprep.subr.bf16.mxu0 %v9066_v3 }
0x1e9b   : > { %v6111_v53 = vpop.f32.mrb[46].mxu0 }
0x1e9c   : > { %v8157_v54 = vpop.f32.mrb[47].mxu0  ;;  %8167 = vmatmul.mubr.msk.f32.vlgmr.msra.gmra.mrb[48].mxu0 %vm366_vm1, %v6111_v53  ;;  %8189 = vmatmul.mubr.msk.f32.vlgmr.msra.gmra.mrb[48].mxu1 %vm366_vm1, %v6111_v53 }
0x1e9d   : > { %8662 = vmatpush3.bf16.msra.mxu0 %v9344_v7  ;;  %8674 = vmatpush3.bf16.msra.mxu1 %v9346_v8 }
0x1e9e   : > { %8663 = vmatprep.subr.bf16.mxu0 %v9066_v3  ;;  %8675 = vmatprep.subr.bf16.mxu1 %v9066_v3 }
0x1e9f   : > { %8177 = vmatprep.mubr.msk.f32.mxu0 %vm9067_vm0, %v9068_v6  ;;  %8199 = vmatprep.mubr.msk.f32.mxu1 %vm9067_vm0, %v9068_v6 }
0x1ea1   : > { %8665 = vmatpush3.bf16.msra.mxu0 %v9364_v16  ;;  %8677 = vmatpush3.bf16.msra.mxu1 %v9366_v18 }
0x1ea2   : > { %8678 = vmatprep.subr.bf16.mxu0 %v9066_v3  ;;  %8690 = vmatprep.subr.bf16.mxu1 %v9066_v3 }
0x1ea4   : > { %8178 = vmatmul.mubr.msk.f32.vlgmr.msra.gmra.mrb[48].mxu0 %vm366_vm1, %v10040_v45  ;;  %8200 = vmatmul.mubr.msk.f32.vlgmr.msra.gmra.mrb[48].mxu1 %vm366_vm1, %v10040_v45 }
0x1ea5   : > { %8680 = vmatpush3.bf16.msra.mxu0 %v9388_v26  ;;  %8692 = vmatpush3.bf16.msra.mxu1 %v9390_v27 }
0x1ea6   : > { %8681 = vmatprep.subr.bf16.mxu0 %v9066_v3  ;;  %8693 = vmatprep.subr.bf16.mxu1 %v9066_v3 }
0x1ea7   : > { %8210 = vmatprep.mubr.msk.f32.mxu0 %vm9067_vm0, %v9068_v6  ;;  %8232 = vmatprep.mubr.msk.f32.mxu1 %vm9067_vm0, %v9068_v6 }
0x1ea9   : > { %8683 = vmatpush3.bf16.msra.mxu0 %v9412_v32  ;;  %8695 = vmatpush3.bf16.msra.mxu1 %v9414_v33 }
0x1eaa   : > { %8684 = vmatprep.subr.bf16.mxu0 %v9066_v3  ;;  %8696 = vmatprep.subr.bf16.mxu1 %v9066_v3 }
0x1eac   : > { %8211 = vmatmul.mubr.msk.f32.vlgmr.msra.gmra.mrb[50].mxu0 %vm366_vm1, %v6111_v53  ;;  %8233 = vmatmul.mubr.msk.f32.vlgmr.msra.gmra.mrb[50].mxu1 %vm366_vm1, %v6111_v53 }
0x1ead   : > { %8686 = vmatpush3.bf16.msra.mxu0 %v9436_v38  ;;  %8698 = vmatpush3.bf16.msra.mxu1 %v9438_v39 }
0x1eae   : > { %8687 = vmatprep.subr.bf16.mxu0 %v9066_v3  ;;  %8699 = vmatprep.subr.bf16.mxu1 %v9066_v3 }
0x1eaf   : > { %8221 = vmatprep.mubr.msk.f32.mxu0 %vm9067_vm0, %v9068_v6  ;;  %8243 = vmatprep.mubr.msk.f32.mxu1 %vm9067_vm0, %v9068_v6 }
0x1eb1   : > { %8689 = vmatpush3.bf16.msra.mxu0 %v9458_v44  ;;  %8701 = vmatpush3.bf16.msra.mxu1 %v9460_v46 }
0x1eb4   : > { %8222 = vmatmul.mubr.msk.f32.vlgmr.msra.gmra.mrb[50].mxu0 %vm366_vm1, %v10040_v45  ;;  %8244 = vmatmul.mubr.msk.f32.vlgmr.msra.gmra.mrb[50].mxu1 %vm366_vm1, %v10040_v45 }
0x1f77   : > { %v6255_v58 = vpop.f32.mrb[48].mxu0  ;;  %v6397_v62 = vpop.f32.mrb[48].mxu1 }
0x1f78   : > { %v8730_v3 = vadd.f32 %v6255_v58, %v9493_v51  ;;  %v8731_v7 = vadd.f32 %v6397_v62, %v9496_v52  ;;  %v8179_v8 = vpop.f32.mrb[49].mxu0  ;;  %v8201_v16 = vpop.f32.mrb[49].mxu1 }
0x1f7a   : > { %v6966_v18 = vmul.f32 -1.442695, %v8730_v3  ;;  %v6967_v6 = vmul.f32 -1.442695, %v8731_v7 }
0x1f7c   : > { %8984 = vpow2.f32 %v6966_v18 }
0x1f7d   : > { %8986 = vpow2.f32 %v6967_v6 }
0x1f86   : > { %v8985_v26 = vpop.eup %8984 }
0x1f87   : > { %v8987_v27 = vpop.eup %8986  ;;  %v6689_v32 = vadd.f32 1.0, %v8985_v26  ;;  %v6539_v33 = vpop.f32.mrb[50].mxu0 }
0x1f88   : > { %v6681_v38 = vpop.f32.mrb[50].mxu1  ;;  %v6695_v39 = vadd.f32 1.0, %v8987_v27  ;;  %v8732_v44 = vadd.f32 %v6539_v33, %v9507_v2  ;;  %v8223_v55 = vpop.f32.mrb[51].mxu0 }
0x1f89   : > { %v8733_v46 = vadd.f32 %v6681_v38, %v9510_v4  ;;  %v8245_v51 = vpop.f32.mrb[51].mxu1  ;;  %8988 = vrcp.f32 %v6689_v32 }
0x1f8a   : > { %8990 = vrcp.f32 %v6695_v39 }
0x1f8b   : > { %v6968_v52 = vmul.f32 -1.442695, %v8733_v46  ;;  %8992 = vtanh.f32 %v8732_v44 }
0x1f8d   : > { %8994 = vpow2.f32 %v6968_v52 }
0x1f93   : > { %v8989_v17 = vpop.eup %8988 }
0x1f94   : > { %v8991_v34 = vpop.eup %8990 }
0x1f95   : > { %v8993_v56 = vpop.eup %8992  ;;  %v6705_v59 = vmul.f32 %v8991_v34, %v10036_v63 }
0x1f96   : > { %v6706_v61 = vmul.f32 %v8993_v56, %v8989_v17 }
0x1f97   : > { %v8995_v60 = vpop.eup %8994 }
0x1f98   : > { %v6702_v28 = vadd.f32 1.0, %v8995_v60  ;;  %v6707_v2 = vadd.f32 %v6706_v61, %v6705_v59 }
0x1f9a   : > { %8996 = vrcp.f32 %v6702_v28 }
0x1f9b   : > { %8998 = vtanh.f32 %v6707_v2 }
0x1fa4   : > { %v8997_v4 = vpop.eup %8996 }
0x1fa5   : > { %v8999_v0 = vpop.eup %8998 }
0x1fa6   : > { %v6709_v21 = vmul.f32 %v8999_v0, %v8997_v4 }
0x1fa8   : > { %v6710_v49 = vadd.f32 %v9776_v1, %v6709_v21 }
0x1faa   : > { %6711 = vst.msk [vmem:[%s297_s23] sm:$0xff] %vm366_vm1, %v6710_v49 }
0x1fab   : > { %9015 = shalt.err (!%p9012_p3)
}
0x1fac   : > { %s9016_s18 = scalar_lea.hbm %s10116_s9, 128  ;;  %s9020_s20 = scalar_lea.hbm %s10166_s7, 256 }
0x1fad   : > { %p9017_p4 = scmp.ne.s32.totalorder %s10116_s9, %s9016_s18  ;;  %p9021_p9 = scmp.lt.u32.totalorder %s10116_s9, %s10166_s7 }
0x1fae   : > { %p9022_p10 = scmp.lt.u32.totalorder %s9020_s20, %s9016_s18  ;;  %p9024_p12 = scmp.lt.u32.totalorder %s9016_s18, %s10116_s9 }
0x1faf   : > { %p9018_p7 = pnand %p9017_p4, %p9148_p5 }
0x1fb0   : > { %p9023_p11 = por %p9022_p10, %p9021_p9 }
0x1fb1   : > { %p9019_p8 = pneg %p9018_p7 }
0x1fb2   : > { %p9025_p13 = por %p9024_p12, %p9023_p11 }
0x1fb4   : > { %p9026_p0 = pnand %p9025_p13, %p9019_p8 }
0x1fb6   : > { %9029 = shalt.err (!%p9026_p0)
}
0x1fb7   : > { %8798 = dma.vmem_to_hbm [thread:$0]  (%p9148_p5), %s10118_s29, 128, %s10116_s9, %s6713_s13  }
0x1fb8 PF: > { %p8804_p1 = scmp.ge.s32.totalorder %s9064_s27, 2  ;;  %s6738_s8 = sand.u32 1, %s9052_s24  }
0x1fb9   : > { %s6739_s21 = scalar_lea.sflag [#allocation3], %s6738_s8 }
0x1fba   : > { %p8801_p2 = pnand %p8804_p1, %p9152_p6 }
0x1fbc   : > { %9047 = dma.done.wait (!%p8801_p2), %s6739_s21, 128  }
0x1fbd   : > { %9049 = vsyncadd (!%p8801_p2), %s6739_s21, 4294967168  ;;  %p17_p3 = scmp.ge.s32.totalorder %s9135_s30, 4   ;;  %s10169_s24 = smov %s9056_s25 }
0x1fbe   : > { %s10170_s25 = smov %s9060_s26  ;;  %s10171_s26 = smov %s9146_s10 }
0x1fbf   : > { %s10172_s27 = smov %s9135_s30  ;;  %19 = sbr.rel (!%p17_p3) target bundleno = 3 (0x3), region = 101 }
0x1fc6   :  { %6744 = vsyncpa [#allocation3], 1 }
0x1fc7   :  { %6746 = vsyncpa [#allocation3 + $0x1], 1 }

</bundles_post_ra>
